<compile_context>
chip_gen: v7x
topology: tpu7x:2x2x1
jax: 0.10.0
libtpu: 0.0.40
codegen_flags: <defaults>
</compile_context>

<pallas_src>
import jax
import jax.numpy as jnp
from jax.experimental import pallas as pl
from jax.experimental.pallas import tpu as pltpu

B, S, D, H, FFN, VOCAB = 2, 8, 32, 4, 64, 128
HD = D // H
L = 2            # layers in the "second half" shard (num_layers=4 -> 4 - 4//2 = 2)
EPS = 1e-5
NEG = -1e9       # additive cross-batch mask value (exp underflows to exactly 0)


def _layernorm(t, g, be):
    # One-pass variance: E[x^2] - mu^2 (the two reductions issue independently).
    mu = jnp.mean(t, axis=-1, keepdims=True)
    var = jnp.mean(t * t, axis=-1, keepdims=True) - mu * mu
    return (t - mu) * jax.lax.rsqrt(var + EPS) * g + be


def shard_kernel(x_ref,        # (B*S, D)      = (16, 32)
                 wqkv_ref,     # (L, D, 3D)    fused [Q|K|V] projection (pre-transposed)
                 wo_ref,       # (L, D, D)     output proj, buggy permute folded into columns
                 w1_ref,       # (L, D, FFN)
                 w2_ref,       # (L, FFN, D)
                 slab_ref,     # (L, 8, 128)   rows: [b_qkv, b1, bo, b2, g1, be1, g2, be2]
                 wh_ref,       # (D, VOCAB)
                 fslab_ref,    # (3, 128)      rows: [g_final, b_final, b_head]
                 hmask_ref,    # (H*B*S, D)    block-diagonal head mask (0/1)
                 bmask_ref,    # (H*B*S, B*S)  additive cross-batch mask (0 / -1e9)
                 o_ref):       # (B*S, VOCAB)  = (16, 128) lane-dense store
    x = x_ref[...]
    hmask = hmask_ref[...]
    bmask = bmask_ref[...]
    R = B * S                                   # 16 flattened token rows

    for l in range(L):                          # static unroll over the 2 layers
        # ---- fused QKV projection: one MXU pass per layer ----
        qkv = (jnp.dot(x, wqkv_ref[l], preferred_element_type=jnp.float32)
               + slab_ref[l, 0:1, 0:3 * D])                         # (16, 96)
        q = qkv[:, 0:D]                                             # (16, 32)
        k = qkv[:, D:2 * D]                                         # (16, 32)
        v = qkv[:, 2 * D:3 * D]                                     # (16, 32)

        # ---- batched block-diagonal attention (all batches + heads in 2 MXU passes) ----
        # Row r = h*16 + (b*8 + s) holds q[b*8+s, :] restricted to head h's columns.
        q_bd = jnp.broadcast_to(q, (H, R, D)).reshape(H * R, D) * hmask      # (64, 32)
        # NOTE: no 1/sqrt(head_dim) scaling (bug preserved from the module).
        scores = jax.lax.dot_general(
            q_bd, k, (((1,), (1,)), ((), ())),
            preferred_element_type=jnp.float32) + bmask                      # (64, 16)
        # TODO(synk): mask path (masked_fill(mask == 0, -1)) not implemented (mask=None).
        scores = scores - jnp.max(scores, axis=-1, keepdims=True)
        p = jnp.exp(scores)                     # cross-batch entries underflow to 0
        attn = p / jnp.sum(p, axis=-1, keepdims=True)   # exact reciprocal (review note)
        ov = jnp.dot(attn, v, preferred_element_type=jnp.float32) * hmask    # (64, 32)
        # Head-sum back onto (B*S, D): four tile-aligned sublane slice adds (S*B = 16).
        attn_std = ov[0:R] + ov[R:2 * R] + ov[2 * R:3 * R] + ov[3 * R:4 * R]  # (16, 32)

        # Output projection (columns pre-permuted wrapper-side so the standard
        # head-major concat reproduces the module's buggy permute(0,2,3,1)).
        attn_out = (jnp.dot(attn_std, wo_ref[l], preferred_element_type=jnp.float32)
                    + slab_ref[l, 2:3, 0:D])

        # ---- residual + LayerNorm 1 ----
        x1 = _layernorm(x + attn_out, slab_ref[l, 4:5, 0:D], slab_ref[l, 5:6, 0:D])

        # ---- feed-forward ----
        h1 = jnp.maximum(
            jnp.dot(x1, w1_ref[l], preferred_element_type=jnp.float32)
            + slab_ref[l, 1:2, 0:FFN], 0.0)
        ff = (jnp.dot(h1, w2_ref[l], preferred_element_type=jnp.float32)
              + slab_ref[l, 3:4, 0:D])

        # ---- residual + LayerNorm 2 ----
        x = _layernorm(x1 + ff, slab_ref[l, 6:7, 0:D], slab_ref[l, 7:8, 0:D])

    # ---- final LayerNorm + lm_head (lane-dense (16, 128) store) ----
    xn = _layernorm(x, fslab_ref[0:1, 0:D], fslab_ref[1:2, 0:D])
    o_ref[...] = (jnp.dot(xn, wh_ref[...], preferred_element_type=jnp.float32)
                  + fslab_ref[2:3, :])


def transformer_shard_b(x, layer_params, final_params):
    def pad128(v):
        return jnp.pad(v, (0, 128 - v.shape[0]))

    # Fused QKV weight (torch Linear weight is (3D, D); x @ W^T form -> (D, 3D)).
    wqkv_all = jnp.stack([p[0].T for p in layer_params])                     # (L, D, 3D)
    # Fold the buggy permute(0,2,3,1): buggy concat index is d*H + h, kernel produces
    # h*HD + d, so permute wout columns accordingly (then transpose for x @ W form).
    wo_all = jnp.stack([p[2].reshape(D, HD, H).transpose(0, 2, 1).reshape(D, D).T
                        for p in layer_params])                              # (L, D, D)
    w1_all = jnp.stack([p[4].T for p in layer_params])                       # (L, D, FFN)
    w2_all = jnp.stack([p[6].T for p in layer_params])                       # (L, FFN, D)
    # One (8, 128) slab per layer: [b_qkv, b1, bo, b2, g1, be1, g2, be2] (lane-padded).
    slab_all = jnp.stack([jnp.stack([pad128(p[1]), pad128(p[5]), pad128(p[3]),
                                     pad128(p[7]), pad128(p[8]), pad128(p[9]),
                                     pad128(p[10]), pad128(p[11])])
                          for p in layer_params])                            # (L, 8, 128)

    gf, bef, wh, bh = final_params
    fslab = jnp.stack([pad128(gf), pad128(bef), bh])                         # (3, 128)
    wh_t = wh.T                                                              # (D, VOCAB)

    # Static masks, precomputed wrapper-side (review: keep them out of the kernel prologue).
    rows = jnp.arange(H * B * S)
    head_mask = (rows[:, None] // (B * S)
                 == (jnp.arange(D) // HD)[None, :]).astype(jnp.float32)      # (64, 32)
    batch_mask = jnp.where((rows[:, None] % (B * S)) // S
                           == (jnp.arange(B * S) // S)[None, :],
                           0.0, NEG).astype(jnp.float32)                     # (64, 16)

    args = [x.reshape(B * S, D), wqkv_all, wo_all, w1_all, w2_all, slab_all,
            wh_t, fslab, head_mask, batch_mask]

    R = B * S
    flops = L * (2 * R * D * (3 * D)        # fused QKV
                 + 2 * (H * R) * D * R      # scores
                 + 2 * (H * R) * R * D      # attn @ V
                 + 2 * R * D * D            # output projection
                 + 4 * R * D * FFN          # FFN (two matmuls)
                 ) + 2 * R * D * VOCAB      # lm_head
    transcendentals = L * (H * R) * R + (2 * L + 1) * R
    bytes_accessed = sum(int(a.size) * a.dtype.itemsize for a in args) + R * VOCAB * 4

    out_flat = pl.pallas_call(
        shard_kernel,
        out_shape=jax.ShapeDtypeStruct((B * S, VOCAB), jnp.float32),
        in_specs=[pl.BlockSpec(memory_space=pltpu.MemorySpace.VMEM) for _ in args],
        out_specs=pl.BlockSpec(memory_space=pltpu.MemorySpace.VMEM),
        compiler_params=pltpu.CompilerParams(vmem_limit_bytes=4 * 1024 * 1024),
        cost_estimate=pl.CostEstimate(flops=flops,
                                      transcendentals=transcendentals,
                                      bytes_accessed=bytes_accessed),
    )(*args)
    return out_flat.reshape(B, S, VOCAB)


def reference(x, layer_params, final_params):
    """Pure-JAX replica of the PyTorch shard (bugs included) for validation."""
    def ln(t, g, be):
        mu = jnp.mean(t, axis=-1, keepdims=True)
        var = jnp.mean((t - mu) ** 2, axis=-1, keepdims=True)
        return (t - mu) * jax.lax.rsqrt(var + EPS) * g + be

    for (wqkv, bqkv, wout, bout, w1, b1, w2, b2, g1, be1, g2, be2) in layer_params:
        qkv = x @ wqkv.T + bqkv
        qkv = qkv.reshape(B, S, 3, H, HD).transpose(2, 0, 3, 1, 4)
        q, k, v = qkv[0], qkv[1], qkv[2]                 # (B, H, S, HD)
        scores = q @ jnp.swapaxes(k, -2, -1)             # no scaling (bug)
        attn = jax.nn.softmax(scores, axis=-1)
        ao = attn @ v                                    # (B, H, S, HD)
        ao = jnp.transpose(ao, (0, 2, 3, 1)).reshape(B, S, D)   # buggy permute
        x = ln(x + (ao @ wout.T + bout), g1, be1)
        ff = jnp.maximum(x @ w1.T + b1, 0.0) @ w2.T + b2
        x = ln(x + ff, g2, be2)
    gf, bef, wh, bh = final_params
    x = ln(x, gf, bef)
    return x @ wh.T + bh


def make_layer_params(key):
    ks = jax.random.split(key, 12)
    s = 0.02
    return (jax.random.normal(ks[0], (3 * D, D), jnp.float32) * s,
            jax.random.normal(ks[1], (3 * D,), jnp.float32) * s,
            jax.random.normal(ks[2], (D, D), jnp.float32) * s,
            jax.random.normal(ks[3], (D,), jnp.float32) * s,
            jax.random.normal(ks[4], (FFN, D), jnp.float32) * s,
            jax.random.normal(ks[5], (FFN,), jnp.float32) * s,
            jax.random.normal(ks[6], (D, FFN), jnp.float32) * s,
            jax.random.normal(ks[7], (D,), jnp.float32) * s,
            1.0 + jax.random.normal(ks[8], (D,), jnp.float32) * s,
            jax.random.normal(ks[9], (D,), jnp.float32) * s,
            1.0 + jax.random.normal(ks[10], (D,), jnp.float32) * s,
            jax.random.normal(ks[11], (D,), jnp.float32) * s)


def make_final_params(key):
    ks = jax.random.split(key, 4)
    s = 0.02
    return (1.0 + jax.random.normal(ks[0], (D,), jnp.float32) * s,
            jax.random.normal(ks[1], (D,), jnp.float32) * s,
            jax.random.normal(ks[2], (VOCAB, D), jnp.float32) * s,
            jax.random.normal(ks[3], (VOCAB,), jnp.float32) * s)


if __name__ == "__main__":
    key = jax.random.PRNGKey(0)
    kx, kp = jax.random.split(key)
    x = jax.random.normal(kx, (B, S, D), jnp.float32)
    lkeys = jax.random.split(kp, L + 1)
    layer_params = [make_layer_params(lkeys[i]) for i in range(L)]
    final_params = make_final_params(lkeys[L])

    out = transformer_shard_b(x, layer_params, final_params)
    out = jax.block_until_ready(out)

    ref = reference(x, layer_params, final_params)
    assert out.shape == (B, S, VOCAB)
    err = jnp.max(jnp.abs(out - ref))
    assert jnp.allclose(out, ref, atol=1e-4, rtol=1e-4), f"max abs err = {err}"
    print("KERNEL_OK")
</pallas_src>

<mosaic_0001>
module attributes {stable_mosaic.version = 11 : i64} {
  func.func @shard_kernel(%arg0: memref<16x32xf32, #tpu.memory_space<vmem>>, %arg1: memref<2x32x96xf32, #tpu.memory_space<vmem>>, %arg2: memref<2x32x32xf32, #tpu.memory_space<vmem>>, %arg3: memref<2x32x64xf32, #tpu.memory_space<vmem>>, %arg4: memref<2x64x32xf32, #tpu.memory_space<vmem>>, %arg5: memref<2x8x128xf32, #tpu.memory_space<vmem>>, %arg6: memref<32x128xf32, #tpu.memory_space<vmem>>, %arg7: memref<3x128xf32, #tpu.memory_space<vmem>>, %arg8: memref<64x32xf32, #tpu.memory_space<vmem>>, %arg9: memref<64x16xf32, #tpu.memory_space<vmem>>, %arg10: memref<16x128xf32, #tpu.memory_space<vmem>>) attributes {dimension_semantics = [], scalar_prefetch = 0 : i64, scratch_operands = 0 : i64, tpu.core_type = #tpu.core_type<tc>} {
    %c0 = arith.constant 0 : index
    %c0_0 = arith.constant 0 : index
    %0 = vector.load %arg0[%c0, %c0_0] : memref<16x32xf32, #tpu.memory_space<vmem>>, vector<16x32xf32>
    %c0_1 = arith.constant 0 : index
    %c0_2 = arith.constant 0 : index
    %1 = vector.load %arg8[%c0_1, %c0_2] : memref<64x32xf32, #tpu.memory_space<vmem>>, vector<64x32xf32>
    %c0_3 = arith.constant 0 : index
    %c0_4 = arith.constant 0 : index
    %2 = vector.load %arg9[%c0_3, %c0_4] : memref<64x16xf32, #tpu.memory_space<vmem>>, vector<64x16xf32>
    %c0_5 = arith.constant 0 : index
    %c0_6 = arith.constant 0 : index
    %c0_7 = arith.constant 0 : index
    %3 = vector.load %arg1[%c0_5, %c0_6, %c0_7] : memref<2x32x96xf32, #tpu.memory_space<vmem>>, vector<1x32x96xf32>
    %4 = vector.shape_cast %3 : vector<1x32x96xf32> to vector<32x96xf32>
    %cst = arith.constant dense<0.000000e+00> : vector<16x96xf32>
    %5 = tpu.matmul %0, %4, %cst {dimension_numbers = #tpu.dot_dimension_numbers<[1], [0], [0], [1], [0, 0, 1, 1], [], []>} : vector<16x32xf32>, vector<32x96xf32>, vector<16x96xf32> -> vector<16x96xf32>
    %c0_8 = arith.constant 0 : index
    %c0_9 = arith.constant 0 : index
    %c0_10 = arith.constant 0 : index
    %6 = vector.load %arg5[%c0_8, %c0_9, %c0_10] : memref<2x8x128xf32, #tpu.memory_space<vmem>>, vector<1x1x96xf32>
    %7 = vector.shape_cast %6 : vector<1x1x96xf32> to vector<1x96xf32>
    %8 = vector.broadcast %7 : vector<1x96xf32> to vector<16x96xf32>
    %9 = arith.addf %5, %8 : vector<16x96xf32>
    %10 = vector.extract_strided_slice %9 {offsets = [0, 0], sizes = [16, 32], strides = [1, 1]} : vector<16x96xf32> to vector<16x32xf32>
    %11 = vector.extract_strided_slice %9 {offsets = [0, 32], sizes = [16, 32], strides = [1, 1]} : vector<16x96xf32> to vector<16x32xf32>
    %12 = vector.extract_strided_slice %9 {offsets = [0, 64], sizes = [16, 32], strides = [1, 1]} : vector<16x96xf32> to vector<16x32xf32>
    %13 = vector.shape_cast %10 : vector<16x32xf32> to vector<1x16x32xf32>
    %14 = vector.broadcast %13 : vector<1x16x32xf32> to vector<4x16x32xf32>
    %15 = vector.shape_cast %14 : vector<4x16x32xf32> to vector<64x32xf32>
    %16 = arith.mulf %15, %1 : vector<64x32xf32>
    %cst_11 = arith.constant dense<0.000000e+00> : vector<64x16xf32>
    %17 = tpu.matmul %16, %11, %cst_11 {dimension_numbers = #tpu.dot_dimension_numbers<[1], [1], [0], [0], [0, 0, 1, 0], [], []>} : vector<64x32xf32>, vector<16x32xf32>, vector<64x16xf32> -> vector<64x16xf32>
    %18 = arith.addf %17, %2 : vector<64x16xf32>
    %cst_12 = arith.constant dense<0xFF800000> : vector<64xf32>
    %19 = vector.multi_reduction <maximumf>, %18, %cst_12 [1] : vector<64x16xf32> to vector<64xf32>
    %20 = vector.shape_cast %19 : vector<64xf32> to vector<64x1xf32>
    %21 = vector.broadcast %20 : vector<64x1xf32> to vector<64x16xf32>
    %22 = arith.subf %18, %21 : vector<64x16xf32>
    %23 = math.exp %22 : vector<64x16xf32>
    %cst_13 = arith.constant dense<0.000000e+00> : vector<64xf32>
    %24 = vector.multi_reduction <add>, %23, %cst_13 [1] : vector<64x16xf32> to vector<64xf32>
    %25 = vector.shape_cast %24 : vector<64xf32> to vector<64x1xf32>
    %26 = vector.broadcast %25 : vector<64x1xf32> to vector<64x16xf32>
    %27 = arith.divf %23, %26 : vector<64x16xf32>
    %cst_14 = arith.constant dense<0.000000e+00> : vector<64x32xf32>
    %28 = tpu.matmul %27, %12, %cst_14 {dimension_numbers = #tpu.dot_dimension_numbers<[1], [0], [0], [1], [0, 0, 1, 1], [], []>} : vector<64x16xf32>, vector<16x32xf32>, vector<64x32xf32> -> vector<64x32xf32>
    %29 = arith.mulf %28, %1 : vector<64x32xf32>
    %30 = vector.extract_strided_slice %29 {offsets = [0, 0], sizes = [16, 32], strides = [1, 1]} : vector<64x32xf32> to vector<16x32xf32>
    %31 = vector.extract_strided_slice %29 {offsets = [16, 0], sizes = [16, 32], strides = [1, 1]} : vector<64x32xf32> to vector<16x32xf32>
    %32 = arith.addf %30, %31 : vector<16x32xf32>
    %33 = vector.extract_strided_slice %29 {offsets = [32, 0], sizes = [16, 32], strides = [1, 1]} : vector<64x32xf32> to vector<16x32xf32>
    %34 = arith.addf %32, %33 : vector<16x32xf32>
    %35 = vector.extract_strided_slice %29 {offsets = [48, 0], sizes = [16, 32], strides = [1, 1]} : vector<64x32xf32> to vector<16x32xf32>
    %36 = arith.addf %34, %35 : vector<16x32xf32>
    %c0_15 = arith.constant 0 : index
    %c0_16 = arith.constant 0 : index
    %c0_17 = arith.constant 0 : index
    %37 = vector.load %arg2[%c0_15, %c0_16, %c0_17] : memref<2x32x32xf32, #tpu.memory_space<vmem>>, vector<1x32x32xf32>
    %38 = vector.shape_cast %37 : vector<1x32x32xf32> to vector<32x32xf32>
    %cst_18 = arith.constant dense<0.000000e+00> : vector<16x32xf32>
    %39 = tpu.matmul %36, %38, %cst_18 {dimension_numbers = #tpu.dot_dimension_numbers<[1], [0], [0], [1], [0, 0, 1, 1], [], []>} : vector<16x32xf32>, vector<32x32xf32>, vector<16x32xf32> -> vector<16x32xf32>
    %c0_19 = arith.constant 0 : index
    %c2 = arith.constant 2 : index
    %c0_20 = arith.constant 0 : index
    %40 = vector.load %arg5[%c0_19, %c2, %c0_20] : memref<2x8x128xf32, #tpu.memory_space<vmem>>, vector<1x1x32xf32>
    %41 = vector.shape_cast %40 : vector<1x1x32xf32> to vector<1x32xf32>
    %42 = vector.broadcast %41 : vector<1x32xf32> to vector<16x32xf32>
    %43 = arith.addf %39, %42 : vector<16x32xf32>
    %44 = arith.addf %0, %43 : vector<16x32xf32>
    %c0_21 = arith.constant 0 : index
    %c4 = arith.constant 4 : index
    %c0_22 = arith.constant 0 : index
    %45 = vector.load %arg5[%c0_21, %c4, %c0_22] : memref<2x8x128xf32, #tpu.memory_space<vmem>>, vector<1x1x32xf32>
    %46 = vector.shape_cast %45 : vector<1x1x32xf32> to vector<1x32xf32>
    %c0_23 = arith.constant 0 : index
    %c5 = arith.constant 5 : index
    %c0_24 = arith.constant 0 : index
    %47 = vector.load %arg5[%c0_23, %c5, %c0_24] : memref<2x8x128xf32, #tpu.memory_space<vmem>>, vector<1x1x32xf32>
    %48 = vector.shape_cast %47 : vector<1x1x32xf32> to vector<1x32xf32>
    %cst_25 = arith.constant dense<0.000000e+00> : vector<16xf32>
    %49 = vector.multi_reduction <add>, %44, %cst_25 [1] : vector<16x32xf32> to vector<16xf32>
    %50 = vector.shape_cast %49 : vector<16xf32> to vector<16x1xf32>
    %cst_26 = arith.constant 3.200000e+01 : f32
    %51 = vector.broadcast %cst_26 : f32 to vector<16x1xf32>
    %52 = arith.divf %50, %51 : vector<16x1xf32>
    %53 = arith.mulf %44, %44 : vector<16x32xf32>
    %cst_27 = arith.constant dense<0.000000e+00> : vector<16xf32>
    %54 = vector.multi_reduction <add>, %53, %cst_27 [1] : vector<16x32xf32> to vector<16xf32>
    %55 = vector.shape_cast %54 : vector<16xf32> to vector<16x1xf32>
    %cst_28 = arith.constant 3.200000e+01 : f32
    %56 = vector.broadcast %cst_28 : f32 to vector<16x1xf32>
    %57 = arith.divf %55, %56 : vector<16x1xf32>
    %58 = arith.mulf %52, %52 : vector<16x1xf32>
    %59 = arith.subf %57, %58 : vector<16x1xf32>
    %60 = vector.broadcast %52 : vector<16x1xf32> to vector<16x32xf32>
    %61 = arith.subf %44, %60 : vector<16x32xf32>
    %cst_29 = arith.constant 9.99999974E-6 : f32
    %62 = vector.broadcast %cst_29 : f32 to vector<16x1xf32>
    %63 = arith.addf %59, %62 : vector<16x1xf32>
    %64 = math.rsqrt %63 : vector<16x1xf32>
    %65 = vector.broadcast %64 : vector<16x1xf32> to vector<16x32xf32>
    %66 = arith.mulf %61, %65 : vector<16x32xf32>
    %67 = vector.broadcast %46 : vector<1x32xf32> to vector<16x32xf32>
    %68 = arith.mulf %66, %67 : vector<16x32xf32>
    %69 = vector.broadcast %48 : vector<1x32xf32> to vector<16x32xf32>
    %70 = arith.addf %68, %69 : vector<16x32xf32>
    %c0_30 = arith.constant 0 : index
    %c0_31 = arith.constant 0 : index
    %c0_32 = arith.constant 0 : index
    %71 = vector.load %arg3[%c0_30, %c0_31, %c0_32] : memref<2x32x64xf32, #tpu.memory_space<vmem>>, vector<1x32x64xf32>
    %72 = vector.shape_cast %71 : vector<1x32x64xf32> to vector<32x64xf32>
    %cst_33 = arith.constant dense<0.000000e+00> : vector<16x64xf32>
    %73 = tpu.matmul %70, %72, %cst_33 {dimension_numbers = #tpu.dot_dimension_numbers<[1], [0], [0], [1], [0, 0, 1, 1], [], []>} : vector<16x32xf32>, vector<32x64xf32>, vector<16x64xf32> -> vector<16x64xf32>
    %c0_34 = arith.constant 0 : index
    %c1 = arith.constant 1 : index
    %c0_35 = arith.constant 0 : index
    %74 = vector.load %arg5[%c0_34, %c1, %c0_35] : memref<2x8x128xf32, #tpu.memory_space<vmem>>, vector<1x1x64xf32>
    %75 = vector.shape_cast %74 : vector<1x1x64xf32> to vector<1x64xf32>
    %76 = vector.broadcast %75 : vector<1x64xf32> to vector<16x64xf32>
    %77 = arith.addf %73, %76 : vector<16x64xf32>
    %cst_36 = arith.constant 0.000000e+00 : f32
    %78 = vector.broadcast %cst_36 : f32 to vector<16x64xf32>
    %79 = arith.maximumf %77, %78 : vector<16x64xf32>
    %c0_37 = arith.constant 0 : index
    %c0_38 = arith.constant 0 : index
    %c0_39 = arith.constant 0 : index
    %80 = vector.load %arg4[%c0_37, %c0_38, %c0_39] : memref<2x64x32xf32, #tpu.memory_space<vmem>>, vector<1x64x32xf32>
    %81 = vector.shape_cast %80 : vector<1x64x32xf32> to vector<64x32xf32>
    %cst_40 = arith.constant dense<0.000000e+00> : vector<16x32xf32>
    %82 = tpu.matmul %79, %81, %cst_40 {dimension_numbers = #tpu.dot_dimension_numbers<[1], [0], [0], [1], [0, 0, 1, 1], [], []>} : vector<16x64xf32>, vector<64x32xf32>, vector<16x32xf32> -> vector<16x32xf32>
    %c0_41 = arith.constant 0 : index
    %c3 = arith.constant 3 : index
    %c0_42 = arith.constant 0 : index
    %83 = vector.load %arg5[%c0_41, %c3, %c0_42] : memref<2x8x128xf32, #tpu.memory_space<vmem>>, vector<1x1x32xf32>
    %84 = vector.shape_cast %83 : vector<1x1x32xf32> to vector<1x32xf32>
    %85 = vector.broadcast %84 : vector<1x32xf32> to vector<16x32xf32>
    %86 = arith.addf %82, %85 : vector<16x32xf32>
    %87 = arith.addf %70, %86 : vector<16x32xf32>
    %c0_43 = arith.constant 0 : index
    %c6 = arith.constant 6 : index
    %c0_44 = arith.constant 0 : index
    %88 = vector.load %arg5[%c0_43, %c6, %c0_44] : memref<2x8x128xf32, #tpu.memory_space<vmem>>, vector<1x1x32xf32>
    %89 = vector.shape_cast %88 : vector<1x1x32xf32> to vector<1x32xf32>
    %c0_45 = arith.constant 0 : index
    %c7 = arith.constant 7 : index
    %c0_46 = arith.constant 0 : index
    %90 = vector.load %arg5[%c0_45, %c7, %c0_46] : memref<2x8x128xf32, #tpu.memory_space<vmem>>, vector<1x1x32xf32>
    %91 = vector.shape_cast %90 : vector<1x1x32xf32> to vector<1x32xf32>
    %cst_47 = arith.constant dense<0.000000e+00> : vector<16xf32>
    %92 = vector.multi_reduction <add>, %87, %cst_47 [1] : vector<16x32xf32> to vector<16xf32>
    %93 = vector.shape_cast %92 : vector<16xf32> to vector<16x1xf32>
    %cst_48 = arith.constant 3.200000e+01 : f32
    %94 = vector.broadcast %cst_48 : f32 to vector<16x1xf32>
    %95 = arith.divf %93, %94 : vector<16x1xf32>
    %96 = arith.mulf %87, %87 : vector<16x32xf32>
    %cst_49 = arith.constant dense<0.000000e+00> : vector<16xf32>
    %97 = vector.multi_reduction <add>, %96, %cst_49 [1] : vector<16x32xf32> to vector<16xf32>
    %98 = vector.shape_cast %97 : vector<16xf32> to vector<16x1xf32>
    %cst_50 = arith.constant 3.200000e+01 : f32
    %99 = vector.broadcast %cst_50 : f32 to vector<16x1xf32>
    %100 = arith.divf %98, %99 : vector<16x1xf32>
    %101 = arith.mulf %95, %95 : vector<16x1xf32>
    %102 = arith.subf %100, %101 : vector<16x1xf32>
    %103 = vector.broadcast %95 : vector<16x1xf32> to vector<16x32xf32>
    %104 = arith.subf %87, %103 : vector<16x32xf32>
    %cst_51 = arith.constant 9.99999974E-6 : f32
    %105 = vector.broadcast %cst_51 : f32 to vector<16x1xf32>
    %106 = arith.addf %102, %105 : vector<16x1xf32>
    %107 = math.rsqrt %106 : vector<16x1xf32>
    %108 = vector.broadcast %107 : vector<16x1xf32> to vector<16x32xf32>
    %109 = arith.mulf %104, %108 : vector<16x32xf32>
    %110 = vector.broadcast %89 : vector<1x32xf32> to vector<16x32xf32>
    %111 = arith.mulf %109, %110 : vector<16x32xf32>
    %112 = vector.broadcast %91 : vector<1x32xf32> to vector<16x32xf32>
    %113 = arith.addf %111, %112 : vector<16x32xf32>
    %c1_52 = arith.constant 1 : index
    %c0_53 = arith.constant 0 : index
    %c0_54 = arith.constant 0 : index
    %114 = vector.load %arg1[%c1_52, %c0_53, %c0_54] : memref<2x32x96xf32, #tpu.memory_space<vmem>>, vector<1x32x96xf32>
    %115 = vector.shape_cast %114 : vector<1x32x96xf32> to vector<32x96xf32>
    %cst_55 = arith.constant dense<0.000000e+00> : vector<16x96xf32>
    %116 = tpu.matmul %113, %115, %cst_55 {dimension_numbers = #tpu.dot_dimension_numbers<[1], [0], [0], [1], [0, 0, 1, 1], [], []>} : vector<16x32xf32>, vector<32x96xf32>, vector<16x96xf32> -> vector<16x96xf32>
    %c1_56 = arith.constant 1 : index
    %c0_57 = arith.constant 0 : index
    %c0_58 = arith.constant 0 : index
    %117 = vector.load %arg5[%c1_56, %c0_57, %c0_58] : memref<2x8x128xf32, #tpu.memory_space<vmem>>, vector<1x1x96xf32>
    %118 = vector.shape_cast %117 : vector<1x1x96xf32> to vector<1x96xf32>
    %119 = vector.broadcast %118 : vector<1x96xf32> to vector<16x96xf32>
    %120 = arith.addf %116, %119 : vector<16x96xf32>
    %121 = vector.extract_strided_slice %120 {offsets = [0, 0], sizes = [16, 32], strides = [1, 1]} : vector<16x96xf32> to vector<16x32xf32>
    %122 = vector.extract_strided_slice %120 {offsets = [0, 32], sizes = [16, 32], strides = [1, 1]} : vector<16x96xf32> to vector<16x32xf32>
    %123 = vector.extract_strided_slice %120 {offsets = [0, 64], sizes = [16, 32], strides = [1, 1]} : vector<16x96xf32> to vector<16x32xf32>
    %124 = vector.shape_cast %121 : vector<16x32xf32> to vector<1x16x32xf32>
    %125 = vector.broadcast %124 : vector<1x16x32xf32> to vector<4x16x32xf32>
    %126 = vector.shape_cast %125 : vector<4x16x32xf32> to vector<64x32xf32>
    %127 = arith.mulf %126, %1 : vector<64x32xf32>
    %cst_59 = arith.constant dense<0.000000e+00> : vector<64x16xf32>
    %128 = tpu.matmul %127, %122, %cst_59 {dimension_numbers = #tpu.dot_dimension_numbers<[1], [1], [0], [0], [0, 0, 1, 0], [], []>} : vector<64x32xf32>, vector<16x32xf32>, vector<64x16xf32> -> vector<64x16xf32>
    %129 = arith.addf %128, %2 : vector<64x16xf32>
    %cst_60 = arith.constant dense<0xFF800000> : vector<64xf32>
    %130 = vector.multi_reduction <maximumf>, %129, %cst_60 [1] : vector<64x16xf32> to vector<64xf32>
    %131 = vector.shape_cast %130 : vector<64xf32> to vector<64x1xf32>
    %132 = vector.broadcast %131 : vector<64x1xf32> to vector<64x16xf32>
    %133 = arith.subf %129, %132 : vector<64x16xf32>
    %134 = math.exp %133 : vector<64x16xf32>
    %cst_61 = arith.constant dense<0.000000e+00> : vector<64xf32>
    %135 = vector.multi_reduction <add>, %134, %cst_61 [1] : vector<64x16xf32> to vector<64xf32>
    %136 = vector.shape_cast %135 : vector<64xf32> to vector<64x1xf32>
    %137 = vector.broadcast %136 : vector<64x1xf32> to vector<64x16xf32>
    %138 = arith.divf %134, %137 : vector<64x16xf32>
    %cst_62 = arith.constant dense<0.000000e+00> : vector<64x32xf32>
    %139 = tpu.matmul %138, %123, %cst_62 {dimension_numbers = #tpu.dot_dimension_numbers<[1], [0], [0], [1], [0, 0, 1, 1], [], []>} : vector<64x16xf32>, vector<16x32xf32>, vector<64x32xf32> -> vector<64x32xf32>
    %140 = arith.mulf %139, %1 : vector<64x32xf32>
    %141 = vector.extract_strided_slice %140 {offsets = [0, 0], sizes = [16, 32], strides = [1, 1]} : vector<64x32xf32> to vector<16x32xf32>
    %142 = vector.extract_strided_slice %140 {offsets = [16, 0], sizes = [16, 32], strides = [1, 1]} : vector<64x32xf32> to vector<16x32xf32>
    %143 = arith.addf %141, %142 : vector<16x32xf32>
    %144 = vector.extract_strided_slice %140 {offsets = [32, 0], sizes = [16, 32], strides = [1, 1]} : vector<64x32xf32> to vector<16x32xf32>
    %145 = arith.addf %143, %144 : vector<16x32xf32>
    %146 = vector.extract_strided_slice %140 {offsets = [48, 0], sizes = [16, 32], strides = [1, 1]} : vector<64x32xf32> to vector<16x32xf32>
    %147 = arith.addf %145, %146 : vector<16x32xf32>
    %c1_63 = arith.constant 1 : index
    %c0_64 = arith.constant 0 : index
    %c0_65 = arith.constant 0 : index
    %148 = vector.load %arg2[%c1_63, %c0_64, %c0_65] : memref<2x32x32xf32, #tpu.memory_space<vmem>>, vector<1x32x32xf32>
    %149 = vector.shape_cast %148 : vector<1x32x32xf32> to vector<32x32xf32>
    %cst_66 = arith.constant dense<0.000000e+00> : vector<16x32xf32>
    %150 = tpu.matmul %147, %149, %cst_66 {dimension_numbers = #tpu.dot_dimension_numbers<[1], [0], [0], [1], [0, 0, 1, 1], [], []>} : vector<16x32xf32>, vector<32x32xf32>, vector<16x32xf32> -> vector<16x32xf32>
    %c1_67 = arith.constant 1 : index
    %c2_68 = arith.constant 2 : index
    %c0_69 = arith.constant 0 : index
    %151 = vector.load %arg5[%c1_67, %c2_68, %c0_69] : memref<2x8x128xf32, #tpu.memory_space<vmem>>, vector<1x1x32xf32>
    %152 = vector.shape_cast %151 : vector<1x1x32xf32> to vector<1x32xf32>
    %153 = vector.broadcast %152 : vector<1x32xf32> to vector<16x32xf32>
    %154 = arith.addf %150, %153 : vector<16x32xf32>
    %155 = arith.addf %113, %154 : vector<16x32xf32>
    %c1_70 = arith.constant 1 : index
    %c4_71 = arith.constant 4 : index
    %c0_72 = arith.constant 0 : index
    %156 = vector.load %arg5[%c1_70, %c4_71, %c0_72] : memref<2x8x128xf32, #tpu.memory_space<vmem>>, vector<1x1x32xf32>
    %157 = vector.shape_cast %156 : vector<1x1x32xf32> to vector<1x32xf32>
    %c1_73 = arith.constant 1 : index
    %c5_74 = arith.constant 5 : index
    %c0_75 = arith.constant 0 : index
    %158 = vector.load %arg5[%c1_73, %c5_74, %c0_75] : memref<2x8x128xf32, #tpu.memory_space<vmem>>, vector<1x1x32xf32>
    %159 = vector.shape_cast %158 : vector<1x1x32xf32> to vector<1x32xf32>
    %cst_76 = arith.constant dense<0.000000e+00> : vector<16xf32>
    %160 = vector.multi_reduction <add>, %155, %cst_76 [1] : vector<16x32xf32> to vector<16xf32>
    %161 = vector.shape_cast %160 : vector<16xf32> to vector<16x1xf32>
    %cst_77 = arith.constant 3.200000e+01 : f32
    %162 = vector.broadcast %cst_77 : f32 to vector<16x1xf32>
    %163 = arith.divf %161, %162 : vector<16x1xf32>
    %164 = arith.mulf %155, %155 : vector<16x32xf32>
    %cst_78 = arith.constant dense<0.000000e+00> : vector<16xf32>
    %165 = vector.multi_reduction <add>, %164, %cst_78 [1] : vector<16x32xf32> to vector<16xf32>
    %166 = vector.shape_cast %165 : vector<16xf32> to vector<16x1xf32>
    %cst_79 = arith.constant 3.200000e+01 : f32
    %167 = vector.broadcast %cst_79 : f32 to vector<16x1xf32>
    %168 = arith.divf %166, %167 : vector<16x1xf32>
    %169 = arith.mulf %163, %163 : vector<16x1xf32>
    %170 = arith.subf %168, %169 : vector<16x1xf32>
    %171 = vector.broadcast %163 : vector<16x1xf32> to vector<16x32xf32>
    %172 = arith.subf %155, %171 : vector<16x32xf32>
    %cst_80 = arith.constant 9.99999974E-6 : f32
    %173 = vector.broadcast %cst_80 : f32 to vector<16x1xf32>
    %174 = arith.addf %170, %173 : vector<16x1xf32>
    %175 = math.rsqrt %174 : vector<16x1xf32>
    %176 = vector.broadcast %175 : vector<16x1xf32> to vector<16x32xf32>
    %177 = arith.mulf %172, %176 : vector<16x32xf32>
    %178 = vector.broadcast %157 : vector<1x32xf32> to vector<16x32xf32>
    %179 = arith.mulf %177, %178 : vector<16x32xf32>
    %180 = vector.broadcast %159 : vector<1x32xf32> to vector<16x32xf32>
    %181 = arith.addf %179, %180 : vector<16x32xf32>
    %c1_81 = arith.constant 1 : index
    %c0_82 = arith.constant 0 : index
    %c0_83 = arith.constant 0 : index
    %182 = vector.load %arg3[%c1_81, %c0_82, %c0_83] : memref<2x32x64xf32, #tpu.memory_space<vmem>>, vector<1x32x64xf32>
    %183 = vector.shape_cast %182 : vector<1x32x64xf32> to vector<32x64xf32>
    %cst_84 = arith.constant dense<0.000000e+00> : vector<16x64xf32>
    %184 = tpu.matmul %181, %183, %cst_84 {dimension_numbers = #tpu.dot_dimension_numbers<[1], [0], [0], [1], [0, 0, 1, 1], [], []>} : vector<16x32xf32>, vector<32x64xf32>, vector<16x64xf32> -> vector<16x64xf32>
    %c1_85 = arith.constant 1 : index
    %c1_86 = arith.constant 1 : index
    %c0_87 = arith.constant 0 : index
    %185 = vector.load %arg5[%c1_85, %c1_86, %c0_87] : memref<2x8x128xf32, #tpu.memory_space<vmem>>, vector<1x1x64xf32>
    %186 = vector.shape_cast %185 : vector<1x1x64xf32> to vector<1x64xf32>
    %187 = vector.broadcast %186 : vector<1x64xf32> to vector<16x64xf32>
    %188 = arith.addf %184, %187 : vector<16x64xf32>
    %cst_88 = arith.constant 0.000000e+00 : f32
    %189 = vector.broadcast %cst_88 : f32 to vector<16x64xf32>
    %190 = arith.maximumf %188, %189 : vector<16x64xf32>
    %c1_89 = arith.constant 1 : index
    %c0_90 = arith.constant 0 : index
    %c0_91 = arith.constant 0 : index
    %191 = vector.load %arg4[%c1_89, %c0_90, %c0_91] : memref<2x64x32xf32, #tpu.memory_space<vmem>>, vector<1x64x32xf32>
    %192 = vector.shape_cast %191 : vector<1x64x32xf32> to vector<64x32xf32>
    %cst_92 = arith.constant dense<0.000000e+00> : vector<16x32xf32>
    %193 = tpu.matmul %190, %192, %cst_92 {dimension_numbers = #tpu.dot_dimension_numbers<[1], [0], [0], [1], [0, 0, 1, 1], [], []>} : vector<16x64xf32>, vector<64x32xf32>, vector<16x32xf32> -> vector<16x32xf32>
    %c1_93 = arith.constant 1 : index
    %c3_94 = arith.constant 3 : index
    %c0_95 = arith.constant 0 : index
    %194 = vector.load %arg5[%c1_93, %c3_94, %c0_95] : memref<2x8x128xf32, #tpu.memory_space<vmem>>, vector<1x1x32xf32>
    %195 = vector.shape_cast %194 : vector<1x1x32xf32> to vector<1x32xf32>
    %196 = vector.broadcast %195 : vector<1x32xf32> to vector<16x32xf32>
    %197 = arith.addf %193, %196 : vector<16x32xf32>
    %198 = arith.addf %181, %197 : vector<16x32xf32>
    %c1_96 = arith.constant 1 : index
    %c6_97 = arith.constant 6 : index
    %c0_98 = arith.constant 0 : index
    %199 = vector.load %arg5[%c1_96, %c6_97, %c0_98] : memref<2x8x128xf32, #tpu.memory_space<vmem>>, vector<1x1x32xf32>
    %200 = vector.shape_cast %199 : vector<1x1x32xf32> to vector<1x32xf32>
    %c1_99 = arith.constant 1 : index
    %c7_100 = arith.constant 7 : index
    %c0_101 = arith.constant 0 : index
    %201 = vector.load %arg5[%c1_99, %c7_100, %c0_101] : memref<2x8x128xf32, #tpu.memory_space<vmem>>, vector<1x1x32xf32>
    %202 = vector.shape_cast %201 : vector<1x1x32xf32> to vector<1x32xf32>
    %cst_102 = arith.constant dense<0.000000e+00> : vector<16xf32>
    %203 = vector.multi_reduction <add>, %198, %cst_102 [1] : vector<16x32xf32> to vector<16xf32>
    %204 = vector.shape_cast %203 : vector<16xf32> to vector<16x1xf32>
    %cst_103 = arith.constant 3.200000e+01 : f32
    %205 = vector.broadcast %cst_103 : f32 to vector<16x1xf32>
    %206 = arith.divf %204, %205 : vector<16x1xf32>
    %207 = arith.mulf %198, %198 : vector<16x32xf32>
    %cst_104 = arith.constant dense<0.000000e+00> : vector<16xf32>
    %208 = vector.multi_reduction <add>, %207, %cst_104 [1] : vector<16x32xf32> to vector<16xf32>
    %209 = vector.shape_cast %208 : vector<16xf32> to vector<16x1xf32>
    %cst_105 = arith.constant 3.200000e+01 : f32
    %210 = vector.broadcast %cst_105 : f32 to vector<16x1xf32>
    %211 = arith.divf %209, %210 : vector<16x1xf32>
    %212 = arith.mulf %206, %206 : vector<16x1xf32>
    %213 = arith.subf %211, %212 : vector<16x1xf32>
    %214 = vector.broadcast %206 : vector<16x1xf32> to vector<16x32xf32>
    %215 = arith.subf %198, %214 : vector<16x32xf32>
    %cst_106 = arith.constant 9.99999974E-6 : f32
    %216 = vector.broadcast %cst_106 : f32 to vector<16x1xf32>
    %217 = arith.addf %213, %216 : vector<16x1xf32>
    %218 = math.rsqrt %217 : vector<16x1xf32>
    %219 = vector.broadcast %218 : vector<16x1xf32> to vector<16x32xf32>
    %220 = arith.mulf %215, %219 : vector<16x32xf32>
    %221 = vector.broadcast %200 : vector<1x32xf32> to vector<16x32xf32>
    %222 = arith.mulf %220, %221 : vector<16x32xf32>
    %223 = vector.broadcast %202 : vector<1x32xf32> to vector<16x32xf32>
    %224 = arith.addf %222, %223 : vector<16x32xf32>
    %c0_107 = arith.constant 0 : index
    %c0_108 = arith.constant 0 : index
    %225 = vector.load %arg7[%c0_107, %c0_108] : memref<3x128xf32, #tpu.memory_space<vmem>>, vector<1x32xf32>
    %c1_109 = arith.constant 1 : index
    %c0_110 = arith.constant 0 : index
    %226 = vector.load %arg7[%c1_109, %c0_110] : memref<3x128xf32, #tpu.memory_space<vmem>>, vector<1x32xf32>
    %cst_111 = arith.constant dense<0.000000e+00> : vector<16xf32>
    %227 = vector.multi_reduction <add>, %224, %cst_111 [1] : vector<16x32xf32> to vector<16xf32>
    %228 = vector.shape_cast %227 : vector<16xf32> to vector<16x1xf32>
    %cst_112 = arith.constant 3.200000e+01 : f32
    %229 = vector.broadcast %cst_112 : f32 to vector<16x1xf32>
    %230 = arith.divf %228, %229 : vector<16x1xf32>
    %231 = arith.mulf %224, %224 : vector<16x32xf32>
    %cst_113 = arith.constant dense<0.000000e+00> : vector<16xf32>
    %232 = vector.multi_reduction <add>, %231, %cst_113 [1] : vector<16x32xf32> to vector<16xf32>
    %233 = vector.shape_cast %232 : vector<16xf32> to vector<16x1xf32>
    %cst_114 = arith.constant 3.200000e+01 : f32
    %234 = vector.broadcast %cst_114 : f32 to vector<16x1xf32>
    %235 = arith.divf %233, %234 : vector<16x1xf32>
    %236 = arith.mulf %230, %230 : vector<16x1xf32>
    %237 = arith.subf %235, %236 : vector<16x1xf32>
    %238 = vector.broadcast %230 : vector<16x1xf32> to vector<16x32xf32>
    %239 = arith.subf %224, %238 : vector<16x32xf32>
    %cst_115 = arith.constant 9.99999974E-6 : f32
    %240 = vector.broadcast %cst_115 : f32 to vector<16x1xf32>
    %241 = arith.addf %237, %240 : vector<16x1xf32>
    %242 = math.rsqrt %241 : vector<16x1xf32>
    %243 = vector.broadcast %242 : vector<16x1xf32> to vector<16x32xf32>
    %244 = arith.mulf %239, %243 : vector<16x32xf32>
    %245 = vector.broadcast %225 : vector<1x32xf32> to vector<16x32xf32>
    %246 = arith.mulf %244, %245 : vector<16x32xf32>
    %247 = vector.broadcast %226 : vector<1x32xf32> to vector<16x32xf32>
    %248 = arith.addf %246, %247 : vector<16x32xf32>
    %c0_116 = arith.constant 0 : index
    %c0_117 = arith.constant 0 : index
    %249 = vector.load %arg6[%c0_116, %c0_117] : memref<32x128xf32, #tpu.memory_space<vmem>>, vector<32x128xf32>
    %cst_118 = arith.constant dense<0.000000e+00> : vector<16x128xf32>
    %250 = tpu.matmul %248, %249, %cst_118 {dimension_numbers = #tpu.dot_dimension_numbers<[1], [0], [0], [1], [0, 0, 1, 1], [], []>} : vector<16x32xf32>, vector<32x128xf32>, vector<16x128xf32> -> vector<16x128xf32>
    %c2_119 = arith.constant 2 : index
    %c0_120 = arith.constant 0 : index
    %251 = vector.load %arg7[%c2_119, %c0_120] : memref<3x128xf32, #tpu.memory_space<vmem>>, vector<1x128xf32>
    %252 = vector.broadcast %251 : vector<1x128xf32> to vector<16x128xf32>
    %253 = arith.addf %250, %252 : vector<16x128xf32>
    %c0_121 = arith.constant 0 : index
    %c0_122 = arith.constant 0 : index
    %254 = vector.load %arg10[%c0_121, %c0_122] : memref<16x128xf32, #tpu.memory_space<vmem>>, vector<16x128xf32>
    tpu.vector_store %arg10[%c0_121, %c0_122], %253 {strides = array<i32>} : memref<16x128xf32, #tpu.memory_space<vmem>>, vector<16x128xf32>,
    return
  }
}

</mosaic_0001>

<bundles_post_ra>
// kernel: tpu_custom_call.1
= control target key start
LH: loop header
LB: loop body
LE: loop exit
PB: predicated region body
PF: predicated region fallthrough
CT: control target
= control target key end

     0   :  { %vm63_vm0 = vcmask 261120   ;;  %s3089_s0 = inlined_call_operand.vmem [shape: f32[16,32], index: 0, kind: input, shape index: {}]   ;;  %s3090_s1 = inlined_call_operand.vmem [shape: f32[2,32,96], index: 1, kind: input, shape index: {}]   ;;  %s3091_s2 = inlined_call_operand.vmem [shape: f32[2,32,32], index: 2, kind: input, shape index: {}]   ;;  %s3092_s3 = inlined_call_operand.vmem [shape: f32[2,32,64], index: 3, kind: input, shape index: {}]   ;;  %s3093_s4 = inlined_call_operand.vmem [shape: f32[2,64,32], index: 4, kind: input, shape index: {}]   ;;  %s3094_s5 = inlined_call_operand.vmem [shape: f32[2,8,128], index: 5, kind: input, shape index: {}]   ;;  %s3095_s6 = inlined_call_operand.vmem [shape: f32[32,128], index: 6, kind: input, shape index: {}]   ;;  %s3096_s7 = inlined_call_operand.vmem [shape: f32[3,128], index: 7, kind: input, shape index: {}]   ;;  %s3097_s8 = inlined_call_operand.vmem [shape: f32[64,32], index: 8, kind: input, shape index: {}]   ;;  %s3098_s9 = inlined_call_operand.vmem [shape: f32[64,16], index: 9, kind: input, shape index: {}]   ;;  %s3099_s10 = inlined_call_operand.hbm [shape: f32[16,128], index: 10, kind: output, shape index: {}]  }
   0x1   :  { %v54_v0 = vld [vmem:[%s3090_s1] sm:$0xff]  ;;  %v55_v1 = vld [vmem:[%s3090_s1 + $0x8] sm:$0xff]  ;;  %v56_v2 = vld [vmem:[%s3090_s1 + $0x10] sm:$0xff] }
   0x2   :  { %v2281_v3 = vpack.c.bf16 %v55_v1, %v54_v0  ;;  %v57_v4 = vld [vmem:[%s3090_s1 + $0x18] sm:$0xff]  ;;  %v2605_v5 = vld [vmem:[%s3089_s0] sm:$0xff] }
   0x3   :  { %v2285_v6 = vpack.c.bf16 %v57_v4, %v56_v2  ;;  %2110 = vmatprep.mubr.msk.f32.mxu0 %vm63_vm0, %v2605_v5 }
   0x4   :  { %15 = vsyncpa [#allocation3], 0  ;;  %2282 = vmatprep.subr.bf16.mxu0 %v2281_v3  ;;  %v2612_v7 = vld [vmem:[%s3089_s0 + $0x8] sm:$0xff]  ;;  %v1899_v8 = vld [vmem:[%s3094_s5] ss:$0 sm:$0xff]  ;;  %s2530_s0 = smov 96  }
   0x5   :  { %2284 = vmatpush3.bf16.msra.mxu0 %v2281_v3  ;;  %v2622_v12 = vld [vmem:[%s3097_s8] sm:$0xff]  ;;  %vm2632_vm1 = vmpackc.low %vm63_vm0, %vm63_vm0  ;;  %v2643_v21 = vld [vmem:[%s3097_s8 + $0x8] sm:$0xff]  ;;  %vm292_vm2 = vcmask 130048   ;;  %vm772_vm3 = vcmask 523264   ;;  %s2532_s11 = smov [#allocation2]  }
   0x6   :  { %2286 = vmatprep.subr.bf16.mxu0 %v2285_v6  ;;  %v2648_v22 = vld [vmem:[%s3097_s8 + $0x10] sm:$0xff]  ;;  %v2655_v25 = vld [vmem:[%s3097_s8 + $0x18] sm:$0xff]  ;;  %v2661_v26 = vld [vmem:[%s3097_s8 + $0x20] sm:$0xff]  ;;  %s1888_s12 = sshll.u32 %s2532_s11, 4  ;;  %s1889_s12 = int_to_ptr.vmem [resolvable:$true] %s1888_s12 }
   0x7   :  { %v2669_v29 = vld [vmem:[%s3097_s8 + $0x28] sm:$0xff]  ;;  %v2675_v30 = vld [vmem:[%s3097_s8 + $0x30] sm:$0xff]  ;;  %v2683_v33 = vld [vmem:[%s3097_s8 + $0x38] sm:$0xff]  ;;  %s2506_s13 = scalar_lea.vmem %s1889_s12, 256  ;;  %p2511_p1 = scmp.lt.s32.totalorder %s1889_s12, %s1889_s12 }
   0x8   :  { %v2692_v35 = vld [vmem:[%s3098_s9 + $0x8] sm:$0xff]  ;;  %v2697_v36 = vld [vmem:[%s3098_s9] sm:$0xff]  ;;  %v2704_v41 = vld [vmem:[%s3098_s9 + $0x18] sm:$0xff]  ;;  %p2507_p0 = scmp.ne.s32.totalorder %s1889_s12, %s2506_s13  ;;  %p2512_p2 = scmp.lt.s32.totalorder %s2506_s13, %s2506_s13 }
   0x9   :  { %2288 = vmatpush3.bf16.msra.mxu0 %v2285_v6  ;;  %v2710_v44 = vld [vmem:[%s3098_s9 + $0x10] sm:$0xff]  ;;  %v2719_v50 = vld [vmem:[%s3098_s9 + $0x28] sm:$0xff]  ;;  %v2726_v55 = vld [vmem:[%s3098_s9 + $0x20] sm:$0xff] }
   0xa   :  { %v2733_v60 = vld [vmem:[%s3098_s9 + $0x30] sm:$0xff]  ;;  %v2740_v63 = vld [vmem:[%s3098_s9 + $0x38] sm:$0xff]  ;;  %s2531_s9 = smov 64   ;;  %p2513_p3 = por %p2512_p2, %p2511_p1 }
   0xc   :  { %2111 = vmatmul.mubr.msk.f32.vlgmr.msra.gmra.mrb[0].mxu0 %vm63_vm0, %v2612_v7  ;;  %p2514_p4 = pnand %p2513_p3, %p2507_p0 }
  0xdf   :  { %v2112_v9 = vpop.f32.mrb[0].mxu0 }
  0xe0   :  { %v142_v10 = vadd.f32 %v2112_v9, %v1899_v8  ;;  %v136_v11 = vpop.f32.mrb[1].mxu0 }
  0xe1   :  { %v137_v13 = vadd.f32 %v1899_v8, %v136_v11 }
  0xe2   :  { %v146_v23 = vmul.f32 %v142_v10, %v2643_v21  ;;  %v148_v27 = vmul.f32 %v142_v10, %v2655_v25  ;;  %v150_v31 = vmul.f32 %v142_v10, %v2669_v29  ;;  %v152_v34 = vmul.f32 %v142_v10, %v2683_v33 }
  0xe3   :  { %v2624_v14 = vpack.i.bf16 %v142_v10, %v137_v13  ;;  %v145_v15 = vmul.f32 %v137_v13, %v2622_v12  ;;  %v147_v24 = vmul.f32 %v137_v13, %v2648_v22  ;;  %v149_v28 = vmul.f32 %v137_v13, %v2661_v26 }
  0xe4   :  { %v151_v32 = vmul.f32 %v137_v13, %v2675_v30 }
  0xe5   :  { %2395 = vrot.lane.b32.xlu0 %v2624_v14, %s2530_s0  ;;  %2117 = vmatprep.mubr.msk.f32.mxu1 %vm63_vm0, %v145_v15 }
 0x157   :  { %v2396_v16 = vpop.permute.xlu0 %2395 }
 0x158   :  { %v2398_v17 = vunpack.i.h.bf16 %v2396_v16  ;;  %v2397_v18 = vunpack.i.l.bf16 %v2396_v16 }
 0x15a   :  { %v2289_v20 = vpack.c.bf16 %v2398_v17, %v2397_v18 }
 0x15c   :  { %2291 = vmatprep.subr.msk.bf16.mxu1 %vm2632_vm1, %v2289_v20 }
 0x15d   :  { %2294 = vmatpush3.bf16.xpose.msk.msra.mxu1 %vm2632_vm1, %v2289_v20 }
 0x164   :  { %2118 = vmatmul.mubr.msk.f32.vlgmr.msra.gmra.mrb[0].mxu1 %vm63_vm0, %v146_v23 }
 0x165   :  { %2120 = vmatprep.mubr.msk.f32.mxu1 %vm63_vm0, %v147_v24 }
 0x168   :  { %2121 = vmatmul.mubr.msk.f32.gmra.mrb[2].mxu1 %vm63_vm0, %v148_v27 }
 0x169   :  { %2123 = vmatprep.mubr.msk.f32.mxu1 %vm63_vm0, %v149_v28 }
 0x16c   :  { %2124 = vmatmul.mubr.msk.f32.gmra.mrb[4].mxu1 %vm63_vm0, %v150_v31 }
 0x16d   :  { %2126 = vmatprep.mubr.msk.f32.mxu1 %vm63_vm0, %v151_v32 }
 0x170   :  { %2127 = vmatmul.mubr.msk.f32.gmra.mrb[6].mxu1 %vm63_vm0, %v152_v34 }
 0x237   :  { %v2119_v37 = vpop.f32.mrb[0].mxu1 }
 0x238   :  { %v259_v38 = vadd.f32 %v2119_v37, %v2692_v35  ;;  %v253_v39 = vpop.f32.mrb[1].mxu1 }
 0x239   :  { %v254_v40 = vadd.f32 %v253_v39, %v2697_v36 }
 0x23a   :  { %v296_v42 = vsel %vm292_vm2, %v259_v38, -inf }
 0x23b   :  { %297 = vmax.xlane.f32.xlu1 %v296_v42  ;;  %v2122_v43 = vpop.f32.mrb[2].mxu1  ;;  %v293_v45 = vsel %vm292_vm2, %v254_v40, -inf }
 0x23c   :  { %v269_v46 = vadd.f32 %v2122_v43, %v2704_v41  ;;  %v263_v47 = vpop.f32.mrb[3].mxu1  ;;  %294 = vmax.xlane.f32.xlu0 %v293_v45 }
 0x23d   :  { %v264_v48 = vadd.f32 %v263_v47, %v2710_v44 }
 0x23e   :  { %v302_v49 = vsel %vm292_vm2, %v269_v46, -inf }
 0x23f   :  { %303 = vmax.xlane.f32.xlu1 %v302_v49  ;;  %v2125_v51 = vpop.f32.mrb[4].mxu1  ;;  %v299_v54 = vsel %vm292_vm2, %v264_v48, -inf }
 0x240   :  { %v273_v52 = vpop.f32.mrb[5].mxu1  ;;  %v279_v53 = vadd.f32 %v2125_v51, %v2719_v50 }
 0x241   :  { %v274_v58 = vadd.f32 %v273_v52, %v2726_v55 }
 0x242   :  { %v308_v59 = vsel %vm292_vm2, %v279_v53, -inf }
 0x243   :  { %v2128_v56 = vpop.f32.mrb[6].mxu1  ;;  %300 = vmax.xlane.f32.xlu1 %v299_v54  ;;  %v305_v62 = vsel %vm292_vm2, %v274_v58, -inf }
 0x244   :  { %v283_v57 = vpop.f32.mrb[7].mxu1  ;;  %v289_v0 = vadd.f32 %v2128_v56, %v2740_v63 }
 0x245   :  { %v284_v61 = vadd.f32 %v283_v57, %v2733_v60 }
 0x246   :  { %v314_v2 = vsel %vm292_vm2, %v289_v0, -inf }
 0x247   :  { %309 = vmax.xlane.f32.xlu1 %v308_v59  ;;  %v311_v1 = vsel %vm292_vm2, %v284_v61, -inf }
 0x24b   :  { %306 = vmax.xlane.f32.xlu1 %v305_v62 }
 0x24f   :  { %312 = vmax.xlane.f32.xlu1 %v311_v1 }
 0x253   :  { %315 = vmax.xlane.f32.xlu1 %v314_v2 }
 0x2c8   :  { %v298_v3 = vpop.xlane.xlu1 %297 }
 0x2c9   :  { %v318_v4 = vsub.f32 %v259_v38, %v298_v3  ;;  %v295_v6 = vpop.xlane.xlu0 %294 }
 0x2ca   :  { %v317_v8 = vsub.f32 %v254_v40, %v295_v6 }
 0x2cb   :  { %v327_v9 = vmul.f32 1.442695, %v318_v4 }
 0x2cc   :  { %v325_v10 = vmul.f32 1.442695, %v317_v8  ;;  %v304_v11 = vpop.xlane.xlu1 %303 }
 0x2cd   :  { %v320_v13 = vsub.f32 %v269_v46, %v304_v11 }
 0x2ce   :  { %2414 = vpow2.f32 %v325_v10 }
 0x2cf   :  { %2416 = vpow2.f32 %v327_v9  ;;  %v331_v15 = vmul.f32 1.442695, %v320_v13 }
 0x2d0   :  { %v301_v16 = vpop.xlane.xlu1 %300 }
 0x2d1   :  { %v319_v17 = vsub.f32 %v264_v48, %v301_v16  ;;  %2418 = vpow2.f32 %v331_v15 }
 0x2d3   :  { %v329_v18 = vmul.f32 1.442695, %v319_v17 }
 0x2d4   :  { %v310_v20 = vpop.xlane.xlu1 %309 }
 0x2d5   :  { %2420 = vpow2.f32 %v329_v18  ;;  %v322_v23 = vsub.f32 %v279_v53, %v310_v20 }
 0x2d7   :  { %v335_v24 = vmul.f32 1.442695, %v322_v23 }
 0x2d8   :  { %v2415_v27 = vpop.eup %2414  ;;  %v307_v28 = vpop.xlane.xlu1 %306 }
 0x2d9   :  { %2422 = vpow2.f32 %v335_v24  ;;  %v321_v31 = vsub.f32 %v274_v58, %v307_v28  ;;  %v341_v32 = vsel %vm292_vm2, %v2415_v27, 0.0  ;;  %v2417_v34 = vpop.eup %2416 }
 0x2da   :  { %342 = vadd.xlane.f32.xlu1 %v341_v32  ;;  %v344_v40 = vsel %vm292_vm2, %v2417_v34, 0.0 }
 0x2db   :  { %v333_v37 = vmul.f32 1.442695, %v321_v31  ;;  %v2419_v42 = vpop.eup %2418 }
 0x2dc   :  { %v313_v38 = vpop.xlane.xlu1 %312  ;;  %v350_v49 = vsel %vm292_vm2, %v2419_v42, 0.0 }
 0x2dd   :  { %2424 = vpow2.f32 %v333_v37  ;;  %v323_v39 = vsub.f32 %v284_v61, %v313_v38 }
 0x2de   :  { %345 = vadd.xlane.f32.xlu1 %v344_v40  ;;  %v530_v40 = vld [vmem:[%s3091_s2] sm:$0xff] }
 0x2df   :  { %v2421_v43 = vpop.eup %2420  ;;  %v337_v45 = vmul.f32 1.442695, %v323_v39 }
 0x2e0   :  { %v316_v46 = vpop.xlane.xlu1 %315  ;;  %v347_v47 = vsel %vm292_vm2, %v2421_v43, 0.0 }
 0x2e1   :  { %2426 = vpow2.f32 %v337_v45  ;;  %v324_v48 = vsub.f32 %v289_v0, %v316_v46  ;;  %348 = vadd.xlane.f32.xlu0 %v347_v47  ;;  %v532_v45 = vld [vmem:[%s3091_s2 + $0x10] sm:$0xff]  ;;  %v533_v46 = vld [vmem:[%s3091_s2 + $0x18] sm:$0xff] }
 0x2e2   :  { %351 = vadd.xlane.f32.xlu1 %v350_v49  ;;  %v2303_v47 = vpack.c.bf16 %v533_v46, %v532_v45  ;;  %v762_v46 = vld [vmem:[%s3093_s4 + $0x18] sm:$0xff] }
 0x2e3   :  { %v2423_v51 = vpop.eup %2422  ;;  %v339_v52 = vmul.f32 1.442695, %v324_v48 }
 0x2e4   :  { %v356_v53 = vsel %vm292_vm2, %v2423_v51, 0.0 }
 0x2e5   :  { %2428 = vpow2.f32 %v339_v52 }
 0x2e6   :  { %357 = vadd.xlane.f32.xlu1 %v356_v53 }
 0x2e7   :  { %v2425_v54 = vpop.eup %2424 }
 0x2e8   :  { %v353_v56 = vsel %vm292_vm2, %v2425_v54, 0.0 }
 0x2e9   :  { %354 = vadd.xlane.f32.xlu0 %v353_v56 }
 0x2eb   :  { %v2427_v57 = vpop.eup %2426 }
 0x2ec   :  { %v359_v58 = vsel %vm292_vm2, %v2427_v57, 0.0 }
 0x2ed   :  { %360 = vadd.xlane.f32.xlu0 %v359_v58 }
 0x2ef   :  { %v2429_v59 = vpop.eup %2428 }
 0x2f0   :  { %v362_v61 = vsel %vm292_vm2, %v2429_v59, 0.0 }
 0x2f1   :  { %363 = vadd.xlane.f32.xlu1 %v362_v61 }
 0x303   :  { %2400 = vrot.lane.b32.xlu0 %v2624_v14, %s2531_s9 }
 0x367   :  { %v343_v62 = vpop.xlane.xlu1 %342 }
 0x368   :  { %2430 = vrcp.f32 %v343_v62 }
 0x36b   :  { %v346_v0 = vpop.xlane.xlu1 %345 }
 0x36c   :  { %2432 = vrcp.f32 %v346_v0 }
 0x36e   :  { %v349_v2 = vpop.xlane.xlu0 %348 }
 0x36f   :  { %v352_v6 = vpop.xlane.xlu1 %351  ;;  %2434 = vrcp.f32 %v349_v2 }
 0x370   :  { %2436 = vrcp.f32 %v352_v6 }
 0x372   :  { %v2431_v1 = vpop.eup %2430 }
 0x373   :  { %v366_v3 = vmul.f32 %v2431_v1, %v2415_v27  ;;  %v358_v9 = vpop.xlane.xlu1 %357 }
 0x375   :  { %2133 = vmatprep.mubr.msk.f32.mxu0 %vm292_vm2, %v366_v3 }
 0x376   :  { %v355_v4 = vpop.xlane.xlu0 %354  ;;  %v2433_v16 = vpop.eup %2432 }
 0x377   :  { %2438 = vrcp.f32 %v355_v4  ;;  %v368_v18 = vmul.f32 %v2433_v16, %v2417_v34 }
 0x378   :  { %2440 = vrcp.f32 %v358_v9 }
 0x379   :  { %v2435_v17 = vpop.eup %2434 }
 0x37a   :  { %v361_v8 = vpop.xlane.xlu0 %360  ;;  %v2437_v20 = vpop.eup %2436  ;;  %v370_v23 = vmul.f32 %v2435_v17, %v2421_v43 }
 0x37b   :  { %2442 = vrcp.f32 %v361_v8  ;;  %v372_v27 = vmul.f32 %v2437_v20, %v2419_v42  ;;  %v531_v42 = vld [vmem:[%s3091_s2 + $0x8] sm:$0xff] }
 0x37c   :  { %v2299_v43 = vpack.c.bf16 %v531_v42, %v530_v40  ;;  %v759_v40 = vld [vmem:[%s3093_s4] sm:$0xff]  ;;  %v760_v42 = vld [vmem:[%s3093_s4 + $0x8] sm:$0xff] }
 0x37d   :  { %v2315_v45 = vpack.c.bf16 %v760_v42, %v759_v40 }
 0x37e   :  { %v2401_v10 = vpop.permute.xlu0 %2400  ;;  %v364_v14 = vpop.xlane.xlu1 %363  ;;  %2300 = vmatprep.subr.bf16.mxu1 %v2299_v43 }
 0x37f   :  { %v2403_v11 = vunpack.i.h.bf16 %v2401_v10  ;;  %v2402_v13 = vunpack.i.l.bf16 %v2401_v10  ;;  %2444 = vrcp.f32 %v364_v14  ;;  %2302 = vmatpush3.bf16.msra.mxu1 %v2299_v43  ;;  %v761_v43 = vld [vmem:[%s3093_s4 + $0x10] sm:$0xff] }
 0x380   :  { %2304 = vmatprep.subr.bf16.mxu1 %v2303_v47 }
 0x381   :  { %v2295_v15 = vpack.c.bf16 %v2403_v11, %v2402_v13  ;;  %v2439_v24 = vpop.eup %2438  ;;  %v1920_v13 = vld [vmem:[%s3094_s5 + $0x2] ss:$0 sm:$0xff] }
 0x382   :  { %v2441_v28 = vpop.eup %2440  ;;  %v374_v31 = vmul.f32 %v2439_v24, %v2425_v54 }
 0x383   :  { %2296 = vmatprep.subr.bf16.mxu0 %v2295_v15  ;;  %v376_v37 = vmul.f32 %v2441_v28, %v2423_v51  ;;  %2306 = vmatpush3.bf16.msra.mxu1 %v2303_v47  ;;  %v2319_v47 = vpack.c.bf16 %v762_v46, %v761_v43 }
 0x384   :  { %2298 = vmatpush3.bf16.msra.mxu0 %v2295_v15  ;;  %2316 = vmatprep.subr.bf16.mxu1 %v2315_v45 }
 0x385   :  { %v2443_v32 = vpop.eup %2442 }
 0x386   :  { %v378_v39 = vmul.f32 %v2443_v32, %v2427_v57 }
 0x387   :  { %2134 = vmatmul.mubr.msk.f32.vlgmr.msra.gmra.mrb[2].mxu0 %vm292_vm2, %v368_v18 }
 0x388   :  { %2136 = vmatprep.mubr.msk.f32.mxu0 %vm292_vm2, %v370_v23 }
 0x389   :  { %v2445_v38 = vpop.eup %2444 }
 0x38a   :  { %v380_v34 = vmul.f32 %v2445_v38, %v2429_v59 }
 0x38b   :  { %2137 = vmatmul.mubr.msk.f32.gmra.mrb[4].mxu0 %vm292_vm2, %v372_v27 }
 0x38c   :  { %2139 = vmatprep.mubr.msk.f32.mxu0 %vm292_vm2, %v374_v31 }
 0x38f   :  { %2140 = vmatmul.mubr.msk.f32.gmra.mrb[6].mxu0 %vm292_vm2, %v376_v37  ;;  %v669_v37 = vld [vmem:[%s3092_s3 + $0x10] sm:$0xff] }
 0x390   :  { %2142 = vmatprep.mubr.msk.f32.mxu0 %vm292_vm2, %v378_v39  ;;  %v670_v39 = vld [vmem:[%s3092_s3 + $0x18] sm:$0xff] }
 0x393   :  { %2143 = vmatmul.mubr.msk.f32.gmra.mrb[8].mxu0 %vm292_vm2, %v380_v34  ;;  %v2311_v34 = vpack.c.bf16 %v670_v39, %v669_v37  ;;  %v1928_v39 = vld [vmem:[%s3094_s5 + $0x3] ss:$0 sm:$0xff] }
 0x45a   :  { %v2135_v48 = vpop.f32.mrb[2].mxu0 }
 0x45b   :  { %v477_v49 = vpop.f32.mrb[3].mxu0  ;;  %v517_v52 = vmul.f32 %v2135_v48, %v2643_v21  ;;  %v763_v48 = vld [vmem:[%s3093_s4 + $0x20] sm:$0xff] }
 0x45c   :  { %v516_v56 = vmul.f32 %v477_v49, %v2622_v12  ;;  %v764_v49 = vld [vmem:[%s3093_s4 + $0x28] sm:$0xff] }
 0x45e   :  { %v2138_v51 = vpop.f32.mrb[4].mxu0 }
 0x45f   :  { %v519_v53 = vmul.f32 %v2138_v51, %v2655_v25  ;;  %v487_v54 = vpop.f32.mrb[5].mxu0  ;;  %v2323_v51 = vpack.c.bf16 %v764_v49, %v763_v48 }
 0x460   :  { %v518_v57 = vmul.f32 %v487_v54, %v2648_v22 }
 0x461   :  { %v525_v58 = vadd.f32 %v519_v53, %v517_v52 }
 0x462   :  { %v524_v59 = vadd.f32 %v518_v57, %v516_v56  ;;  %v2141_v61 = vpop.f32.mrb[6].mxu0 }
 0x463   :  { %v521_v62 = vmul.f32 %v2141_v61, %v2669_v29  ;;  %v497_v0 = vpop.f32.mrb[7].mxu0 }
 0x464   :  { %v520_v1 = vmul.f32 %v497_v0, %v2661_v26 }
 0x465   :  { %v527_v2 = vadd.f32 %v525_v58, %v521_v62 }
 0x466   :  { %v526_v3 = vadd.f32 %v524_v59, %v520_v1  ;;  %v2144_v4 = vpop.f32.mrb[8].mxu0 }
 0x467   :  { %v523_v6 = vmul.f32 %v2144_v4, %v2683_v33  ;;  %v507_v8 = vpop.f32.mrb[9].mxu0 }
 0x468   :  { %v522_v9 = vmul.f32 %v507_v8, %v2675_v30 }
 0x469   :  { %v529_v10 = vadd.f32 %v527_v2, %v523_v6 }
 0x46a   :  { %v528_v11 = vadd.f32 %v526_v3, %v522_v9  ;;  %v1923_v9 = vld [vmem:[%s3094_s5 + $0x4] ss:$0 sm:$0xff] }
 0x46c   :  { %2153 = vmatprep.mubr.msk.f32.mxu1 %vm63_vm0, %v528_v11  ;;  %v1924_v11 = vld [vmem:[%s3094_s5 + $0x5] ss:$0 sm:$0xff] }
 0x46d   :  { %2154 = vmatmul.mubr.msk.f32.vlgmr.msra.gmra.mrb[8].mxu1 %vm63_vm0, %v529_v10 }
 0x46e   :  { %2318 = vmatpush3.bf16.msra.mxu1 %v2315_v45 }
 0x46f   :  { %2320 = vmatprep.subr.bf16.mxu1 %v2319_v47 }
 0x472   :  { %2322 = vmatpush3.bf16.msra.mxu1 %v2319_v47 }
 0x473   :  { %2324 = vmatprep.subr.bf16.mxu1 %v2323_v51 }
 0x476   :  { %2326 = vmatpush3.bf16.msra.mxu1 %v2323_v51 }
 0x540   :  { %v2155_v14 = vpop.f32.mrb[8].mxu1 }
 0x541   :  { %v617_v15 = vadd.f32 %v2155_v14, %v1920_v13  ;;  %v611_v16 = vpop.f32.mrb[9].mxu1 }
 0x542   :  { %v612_v17 = vadd.f32 %v1920_v13, %v611_v16 }
 0x543   :  { %v621_v18 = vadd.f32 %v617_v15, %v2612_v7  ;;  %v667_v7 = vld [vmem:[%s3092_s3] sm:$0xff] }
 0x544   :  { %v620_v20 = vadd.f32 %v612_v17, %v2605_v5  ;;  %v668_v5 = vld [vmem:[%s3092_s3 + $0x8] sm:$0xff] }
 0x545   :  { %v627_v23 = vsel %vm63_vm0, %v621_v18, 0.0  ;;  %v634_v31 = vmul.f32 %v621_v18, %v621_v18  ;;  %v2307_v38 = vpack.c.bf16 %v668_v5, %v667_v7 }
 0x546   :  { %628 = vadd.xlane.f32.xlu1 %v627_v23  ;;  %v624_v24 = vsel %vm63_vm0, %v620_v20, 0.0  ;;  %v633_v27 = vmul.f32 %v620_v20, %v620_v20 }
 0x547   :  { %v638_v32 = vsel %vm63_vm0, %v634_v31, 0.0  ;;  %2308 = vmatprep.subr.bf16.mxu0 %v2307_v38 }
 0x548   :  { %v635_v28 = vsel %vm63_vm0, %v633_v27, 0.0  ;;  %2310 = vmatpush3.bf16.msra.mxu0 %v2307_v38  ;;  %v766_v27 = vld [vmem:[%s3093_s4 + $0x38] sm:$0xff] }
 0x549   :  { %2312 = vmatprep.subr.bf16.mxu0 %v2311_v34 }
 0x54a   :  { %625 = vadd.xlane.f32.xlu1 %v624_v24 }
 0x54c   :  { %2314 = vmatpush3.bf16.msra.mxu0 %v2311_v34 }
 0x54e   :  { %636 = vadd.xlane.f32.xlu1 %v635_v28 }
 0x552   :  { %639 = vadd.xlane.f32.xlu1 %v638_v32 }
 0x5d3   :  { %v629_v52 = vpop.xlane.xlu1 %628 }
 0x5d4   :  { %v632_v57 = vmul.f32 0.03125, %v629_v52 }
 0x5d6   :  { %v644_v0 = vmul.f32 %v632_v57, %v632_v57  ;;  %v648_v13 = vsub.f32 %v621_v18, %v632_v57  ;;  %v1925_v18 = vld [vmem:[%s3094_s5 + $0x1] ss:$0 sm:$0xff] }
 0x5d7   :  { %v626_v53 = vpop.xlane.xlu1 %625 }
 0x5d8   :  { %v631_v54 = vmul.f32 0.03125, %v626_v53 }
 0x5da   :  { %v643_v58 = vmul.f32 %v631_v54, %v631_v54  ;;  %v647_v6 = vsub.f32 %v620_v20, %v631_v54  ;;  %v765_v20 = vld [vmem:[%s3093_s4 + $0x30] sm:$0xff]  ;;  %v1933_v54 = vld [vmem:[%s3090_s1 + $0x20] sm:$0xff] }
 0x5db   :  { %v637_v56 = vpop.xlane.xlu1 %636  ;;  %v2327_v28 = vpack.c.bf16 %v766_v27, %v765_v20 }
 0x5dc   :  { %v641_v59 = vmul.f32 0.03125, %v637_v56  ;;  %v1934_v56 = vld [vmem:[%s3090_s1 + $0x28] sm:$0xff] }
 0x5dd   :  { %2328 = vmatprep.subr.bf16.mxu1 %v2327_v28  ;;  %v2331_v57 = vpack.c.bf16 %v1934_v56, %v1933_v54 }
 0x5de   :  { %v645_v61 = vsub.f32 %v641_v59, %v643_v58  ;;  %2330 = vmatpush3.bf16.msra.mxu1 %v2327_v28  ;;  %v1935_v58 = vld [vmem:[%s3090_s1 + $0x30] sm:$0xff]  ;;  %v1936_v59 = vld [vmem:[%s3090_s1 + $0x38] sm:$0xff]  ;;  %v1932_v28 = vld [vmem:[%s3094_s5 + $0x7] ss:$0 sm:$0xff] }
 0x5df   :  { %v640_v62 = vpop.xlane.xlu1 %639  ;;  %2332 = vmatprep.subr.bf16.mxu0 %v2331_v57 }
 0x5e0   :  { %v649_v1 = vadd.f32 1e-05, %v645_v61  ;;  %v642_v2 = vmul.f32 0.03125, %v640_v62  ;;  %v2335_v61 = vpack.c.bf16 %v1936_v59, %v1935_v58 }
 0x5e2   :  { %2446 = vrsqrt.f32 %v649_v1  ;;  %v646_v3 = vsub.f32 %v642_v2, %v644_v0 }
 0x5e4   :  { %v650_v4 = vadd.f32 1e-05, %v646_v3 }
 0x5e6   :  { %2448 = vrsqrt.f32 %v650_v4 }
 0x5ec   :  { %v2447_v8 = vpop.eup %2446 }
 0x5ed   :  { %v653_v10 = vmul.f32 %v2447_v8, %v647_v6 }
 0x5ef   :  { %v659_v14 = vmul.f32 %v1923_v9, %v653_v10 }
 0x5f0   :  { %v2449_v15 = vpop.eup %2448 }
 0x5f1   :  { %v654_v16 = vmul.f32 %v2449_v15, %v648_v13  ;;  %v665_v17 = vadd.f32 %v1924_v11, %v659_v14 }
 0x5f3   :  { %v660_v23 = vmul.f32 %v1923_v9, %v654_v16  ;;  %2164 = vmatprep.mubr.msk.f32.mxu0 %vm63_vm0, %v665_v17 }
 0x5f5   :  { %v666_v24 = vadd.f32 %v1924_v11, %v660_v23  ;;  %v1931_v23 = vld [vmem:[%s3094_s5 + $0x6] ss:$0 sm:$0xff] }
 0x5f7   :  { %2165 = vmatmul.mubr.msk.f32.vlgmr.msra.gmra.mrb[10].mxu0 %vm63_vm0, %v666_v24 }
 0x5f8   :  { %2334 = vmatpush3.bf16.msra.mxu0 %v2331_v57 }
 0x5f9   :  { %2336 = vmatprep.subr.bf16.mxu0 %v2335_v61 }
 0x5fc   :  { %2338 = vmatpush3.bf16.msra.mxu0 %v2335_v61 }
 0x6ca   :  { %v2166_v31 = vpop.f32.mrb[10].mxu0 }
 0x6cb   :  { %v754_v32 = vadd.f32 %v2166_v31, %v1925_v18  ;;  %v748_v7 = vpop.f32.mrb[11].mxu0 }
 0x6cc   :  { %v749_v5 = vadd.f32 %v1925_v18, %v748_v7 }
 0x6cd   :  { %v758_v38 = vmax.f32 %v754_v32, 0.0 }
 0x6ce   :  { %v757_v37 = vmax.f32 %v749_v5, 0.0 }
 0x6d0   :  { %2183 = vmatprep.mubr.msk.f32.mxu1 %vm772_vm3, %v757_v37  ;;  %v1938_v37 = vld [vmem:[%s3094_s5 + $0x8] ss:$0 sm:$0xff] }
 0x6d1   :  { %2184 = vmatmul.mubr.msk.f32.vlgmr.msra.gmra.mrb[10].mxu1 %vm772_vm3, %v758_v38 }
 0x7a4   :  { %v2185_v34 = vpop.f32.mrb[10].mxu1 }
 0x7a5   :  { %v851_v40 = vadd.f32 %v2185_v34, %v1928_v39  ;;  %v845_v42 = vpop.f32.mrb[11].mxu1 }
 0x7a6   :  { %v846_v43 = vadd.f32 %v1928_v39, %v845_v42 }
 0x7a7   :  { %v855_v45 = vadd.f32 %v851_v40, %v666_v24 }
 0x7a8   :  { %v854_v46 = vadd.f32 %v846_v43, %v665_v17 }
 0x7a9   :  { %v861_v47 = vsel %vm63_vm0, %v855_v45, 0.0  ;;  %v867_v52 = vmul.f32 %v855_v45, %v855_v45 }
 0x7aa   :  { %862 = vadd.xlane.f32.xlu1 %v861_v47  ;;  %v866_v48 = vmul.f32 %v854_v46, %v854_v46  ;;  %v858_v51 = vsel %vm63_vm0, %v854_v46, 0.0 }
 0x7ab   :  { %v871_v53 = vsel %vm63_vm0, %v867_v52, 0.0 }
 0x7ac   :  { %v868_v49 = vsel %vm63_vm0, %v866_v48, 0.0 }
 0x7ad   :  { %869 = vadd.xlane.f32.xlu0 %v868_v49 }
 0x7ae   :  { %859 = vadd.xlane.f32.xlu1 %v858_v51 }
 0x7b2   :  { %872 = vadd.xlane.f32.xlu1 %v871_v53 }
 0x837   :  { %v863_v62 = vpop.xlane.xlu1 %862 }
 0x838   :  { %v865_v2 = vmul.f32 0.03125, %v863_v62 }
 0x83a   :  { %v870_v0 = vpop.xlane.xlu0 %869  ;;  %v877_v9 = vmul.f32 %v865_v2, %v865_v2  ;;  %v881_v24 = vsub.f32 %v855_v45, %v865_v2 }
 0x83b   :  { %v860_v1 = vpop.xlane.xlu1 %859  ;;  %v874_v4 = vmul.f32 0.03125, %v870_v0 }
 0x83c   :  { %v864_v3 = vmul.f32 0.03125, %v860_v1 }
 0x83e   :  { %v876_v6 = vmul.f32 %v864_v3, %v864_v3  ;;  %v880_v16 = vsub.f32 %v854_v46, %v864_v3 }
 0x83f   :  { %v873_v8 = vpop.xlane.xlu1 %872 }
 0x840   :  { %v878_v10 = vsub.f32 %v874_v4, %v876_v6  ;;  %v875_v11 = vmul.f32 0.03125, %v873_v8 }
 0x842   :  { %v882_v13 = vadd.f32 1e-05, %v878_v10  ;;  %v879_v14 = vsub.f32 %v875_v11, %v877_v9 }
 0x844   :  { %2450 = vrsqrt.f32 %v882_v13  ;;  %v883_v15 = vadd.f32 1e-05, %v879_v14 }
 0x846   :  { %2452 = vrsqrt.f32 %v883_v15 }
 0x84e   :  { %v2451_v17 = vpop.eup %2450 }
 0x84f   :  { %v886_v20 = vmul.f32 %v2451_v17, %v880_v16 }
 0x850   :  { %v2453_v27 = vpop.eup %2452 }
 0x851   :  { %v892_v18 = vmul.f32 %v1931_v23, %v886_v20  ;;  %v887_v31 = vmul.f32 %v2453_v27, %v881_v24 }
 0x853   :  { %v893_v32 = vmul.f32 %v1931_v23, %v887_v31  ;;  %v2868_v7 = vadd.f32 %v1932_v28, %v892_v18 }
 0x855   :  { %v2870_v5 = vadd.f32 %v1932_v28, %v893_v32  ;;  %2194 = vmatprep.mubr.msk.f32.mxu0 %vm63_vm0, %v2868_v7 }
 0x857   :  { %2195 = vmatmul.mubr.msk.f32.vlgmr.msra.gmra.mrb[12].mxu0 %vm63_vm0, %v2870_v5 }
 0x92a   :  { %v2196_v38 = vpop.f32.mrb[12].mxu0 }
 0x92b   :  { %v989_v39 = vadd.f32 %v2196_v38, %v1938_v37  ;;  %v983_v34 = vpop.f32.mrb[13].mxu0 }
 0x92c   :  { %v984_v40 = vadd.f32 %v1938_v37, %v983_v34 }
 0x92d   :  { %v993_v49 = vmul.f32 %v989_v39, %v2643_v21  ;;  %v997_v53 = vmul.f32 %v989_v39, %v2669_v29  ;;  %v999_v21 = vmul.f32 %v989_v39, %v2683_v33 }
 0x92e   :  { %v2879_v42 = vpack.i.bf16 %v989_v39, %v984_v40  ;;  %v992_v43 = vmul.f32 %v984_v40, %v2622_v12  ;;  %v994_v51 = vmul.f32 %v984_v40, %v2648_v22  ;;  %v995_v12 = vmul.f32 %v989_v39, %v2655_v25 }
 0x92f   :  { %v996_v52 = vmul.f32 %v984_v40, %v2661_v26  ;;  %v998_v19 = vmul.f32 %v984_v40, %v2675_v30 }
 0x930   :  { %2405 = vrot.lane.b32.xlu1 %v2879_v42, %s2530_s0  ;;  %2201 = vmatprep.mubr.msk.f32.mxu0 %vm63_vm0, %v992_v43 }
 0x9a2   :  { %v2406_v45 = vpop.permute.xlu1 %2405 }
 0x9a3   :  { %v2408_v46 = vunpack.i.h.bf16 %v2406_v45  ;;  %v2407_v47 = vunpack.i.l.bf16 %v2406_v45 }
 0x9a5   :  { %v2339_v48 = vpack.c.bf16 %v2408_v46, %v2407_v47 }
 0x9a7   :  { %2341 = vmatprep.subr.msk.bf16.mxu0 %vm2632_vm1, %v2339_v48 }
 0x9a8   :  { %2344 = vmatpush3.bf16.xpose.msk.msra.mxu0 %vm2632_vm1, %v2339_v48 }
 0x9af   :  { %2202 = vmatmul.mubr.msk.f32.vlgmr.msra.gmra.mrb[14].mxu0 %vm63_vm0, %v993_v49 }
 0x9b0   :  { %2204 = vmatprep.mubr.msk.f32.mxu0 %vm63_vm0, %v994_v51 }
 0x9b3   :  { %2205 = vmatmul.mubr.msk.f32.gmra.mrb[16].mxu0 %vm63_vm0, %v995_v12 }
 0x9b4   :  { %2207 = vmatprep.mubr.msk.f32.mxu0 %vm63_vm0, %v996_v52 }
 0x9b7   :  { %2208 = vmatmul.mubr.msk.f32.gmra.mrb[18].mxu0 %vm63_vm0, %v997_v53 }
 0x9b8   :  { %2210 = vmatprep.mubr.msk.f32.mxu0 %vm63_vm0, %v998_v19 }
 0x9bb   :  { %2211 = vmatmul.mubr.msk.f32.gmra.mrb[20].mxu0 %vm63_vm0, %v999_v21 }
 0xa82   :  { %v2203_v22 = vpop.f32.mrb[14].mxu0 }
 0xa83   :  { %v1106_v25 = vadd.f32 %v2203_v22, %v2692_v35  ;;  %v1100_v26 = vpop.f32.mrb[15].mxu0 }
 0xa84   :  { %v1101_v54 = vadd.f32 %v1100_v26, %v2697_v36 }
 0xa85   :  { %v1142_v56 = vsel %vm292_vm2, %v1106_v25, -inf }
 0xa86   :  { %1143 = vmax.xlane.f32.xlu0 %v1142_v56  ;;  %v2206_v29 = vpop.f32.mrb[16].mxu0  ;;  %v1139_v30 = vsel %vm292_vm2, %v1101_v54, -inf }
 0xa87   :  { %v1116_v57 = vadd.f32 %v2206_v29, %v2704_v41  ;;  %v1110_v58 = vpop.f32.mrb[17].mxu0  ;;  %1140 = vmax.xlane.f32.xlu1 %v1139_v30 }
 0xa88   :  { %v1111_v33 = vadd.f32 %v1110_v58, %v2710_v44 }
 0xa89   :  { %v1148_v59 = vsel %vm292_vm2, %v1116_v57, -inf }
 0xa8a   :  { %1149 = vmax.xlane.f32.xlu0 %v1148_v59  ;;  %v2209_v61 = vpop.f32.mrb[18].mxu0  ;;  %v1145_v36 = vsel %vm292_vm2, %v1111_v33, -inf }
 0xa8b   :  { %v1120_v35 = vpop.f32.mrb[19].mxu0  ;;  %v1126_v62 = vadd.f32 %v2209_v61, %v2719_v50 }
 0xa8c   :  { %v1121_v2 = vadd.f32 %v1120_v35, %v2726_v55 }
 0xa8d   :  { %v1154_v41 = vsel %vm292_vm2, %v1126_v62, -inf }
 0xa8e   :  { %v2212_v0 = vpop.f32.mrb[20].mxu0  ;;  %1146 = vmax.xlane.f32.xlu0 %v1145_v36  ;;  %v1151_v44 = vsel %vm292_vm2, %v1121_v2, -inf }
 0xa8f   :  { %v1130_v1 = vpop.f32.mrb[21].mxu0  ;;  %v1136_v4 = vadd.f32 %v2212_v0, %v2740_v63 }
 0xa90   :  { %v1131_v3 = vadd.f32 %v1130_v1, %v2733_v60 }
 0xa91   :  { %v1160_v50 = vsel %vm292_vm2, %v1136_v4, -inf }
 0xa92   :  { %1155 = vmax.xlane.f32.xlu0 %v1154_v41  ;;  %v1157_v6 = vsel %vm292_vm2, %v1131_v3, -inf }
 0xa96   :  { %1152 = vmax.xlane.f32.xlu0 %v1151_v44 }
 0xa9a   :  { %1158 = vmax.xlane.f32.xlu0 %v1157_v6 }
 0xa9e   :  { %1161 = vmax.xlane.f32.xlu0 %v1160_v50 }
 0xb13   :  { %v1144_v8 = vpop.xlane.xlu0 %1143 }
 0xb14   :  { %v1164_v9 = vsub.f32 %v1106_v25, %v1144_v8  ;;  %v1141_v10 = vpop.xlane.xlu1 %1140 }
 0xb15   :  { %v1163_v55 = vsub.f32 %v1101_v54, %v1141_v10 }
 0xb16   :  { %v1173_v11 = vmul.f32 1.442695, %v1164_v9 }
 0xb17   :  { %v1171_v13 = vmul.f32 1.442695, %v1163_v55  ;;  %v1150_v14 = vpop.xlane.xlu0 %1149 }
 0xb18   :  { %2454 = vpow2.f32 %v1173_v11  ;;  %v1166_v60 = vsub.f32 %v1116_v57, %v1150_v14  ;;  %v1959_v14 = vld [vmem:[%s3091_s2 + $0x20] sm:$0xff] }
 0xb19   :  { %2456 = vpow2.f32 %v1171_v13 }
 0xb1a   :  { %v1177_v15 = vmul.f32 1.442695, %v1166_v60  ;;  %v1960_v60 = vld [vmem:[%s3091_s2 + $0x28] sm:$0xff] }
 0xb1b   :  { %v1147_v16 = vpop.xlane.xlu0 %1146 }
 0xb1c   :  { %2458 = vpow2.f32 %v1177_v15  ;;  %v1165_v63 = vsub.f32 %v1111_v33, %v1147_v16  ;;  %v2349_v15 = vpack.c.bf16 %v1960_v60, %v1959_v14  ;;  %v1961_v16 = vld [vmem:[%s3091_s2 + $0x30] sm:$0xff] }
 0xb1e   :  { %v1175_v17 = vmul.f32 1.442695, %v1165_v63  ;;  %2350 = vmatprep.subr.bf16.mxu0 %v2349_v15  ;;  %v1962_v63 = vld [vmem:[%s3091_s2 + $0x38] sm:$0xff] }
 0xb1f   :  { %v1156_v23 = vpop.xlane.xlu0 %1155  ;;  %2352 = vmatpush3.bf16.msra.mxu0 %v2349_v15 }
 0xb20   :  { %2460 = vpow2.f32 %v1175_v17  ;;  %v1168_v24 = vsub.f32 %v1126_v62, %v1156_v23  ;;  %v2353_v17 = vpack.c.bf16 %v1962_v63, %v1961_v16 }
 0xb22   :  { %v2919_v20 = vpop.eup %2454  ;;  %v1181_v27 = vmul.f32 1.442695, %v1168_v24  ;;  %2354 = vmatprep.subr.bf16.mxu0 %v2353_v17 }
 0xb23   :  { %v2457_v28 = vpop.eup %2456  ;;  %v1153_v18 = vpop.xlane.xlu0 %1152  ;;  %v1190_v31 = vsel %vm292_vm2, %v2919_v20, 0.0  ;;  %2356 = vmatpush3.bf16.msra.mxu0 %v2353_v17 }
 0xb24   :  { %2462 = vpow2.f32 %v1181_v27  ;;  %v1167_v32 = vsub.f32 %v1121_v2, %v1153_v18  ;;  %1191 = vadd.xlane.f32.xlu1 %v1190_v31  ;;  %v1187_v37 = vsel %vm292_vm2, %v2457_v28, 0.0  ;;  %v2498_v27 = vld [vmem:[%s3097_s8 + $0x8] sm:$0xff]  ;;  %v2499_v18 = vld [vmem:[%s3097_s8 + $0x18] sm:$0xff] }
 0xb25   :  { %1188 = vadd.xlane.f32.xlu0 %v1187_v37  ;;  %v2500_v37 = vld [vmem:[%s3097_s8] sm:$0xff] }
 0xb26   :  { %v2459_v38 = vpop.eup %2458  ;;  %v1179_v39 = vmul.f32 1.442695, %v1167_v32 }
 0xb27   :  { %v1159_v34 = vpop.xlane.xlu0 %1158  ;;  %v1196_v40 = vsel %vm292_vm2, %v2459_v38, 0.0 }
 0xb28   :  { %2464 = vpow2.f32 %v1179_v39  ;;  %v1169_v43 = vsub.f32 %v1131_v3, %v1159_v34  ;;  %1197 = vadd.xlane.f32.xlu1 %v1196_v40  ;;  %v2501_v39 = vld [vmem:[%s3097_s8 + $0x10] sm:$0xff] }
 0xb2a   :  { %v2461_v45 = vpop.eup %2460  ;;  %v1183_v46 = vmul.f32 1.442695, %v1169_v43 }
 0xb2b   :  { %v1162_v47 = vpop.xlane.xlu0 %1161  ;;  %v1193_v48 = vsel %vm292_vm2, %v2461_v45, 0.0 }
 0xb2c   :  { %2466 = vpow2.f32 %v1183_v46  ;;  %v1170_v49 = vsub.f32 %v1136_v4, %v1162_v47  ;;  %1194 = vadd.xlane.f32.xlu0 %v1193_v48  ;;  %v2502_v46 = vld [vmem:[%s3097_s8 + $0x28] sm:$0xff] }
 0xb2e   :  { %v2463_v51 = vpop.eup %2462  ;;  %v1185_v12 = vmul.f32 1.442695, %v1170_v49  ;;  %v2503_v49 = vld [vmem:[%s3097_s8 + $0x20] sm:$0xff] }
 0xb2f   :  { %v1202_v52 = vsel %vm292_vm2, %v2463_v51, 0.0 }
 0xb30   :  { %2468 = vpow2.f32 %v1185_v12  ;;  %1203 = vadd.xlane.f32.xlu1 %v1202_v52 }
 0xb32   :  { %v2465_v53 = vpop.eup %2464 }
 0xb33   :  { %v1199_v19 = vsel %vm292_vm2, %v2465_v53, 0.0 }
 0xb34   :  { %1200 = vadd.xlane.f32.xlu0 %v1199_v19  ;;  %v2504_v19 = vld [vmem:[%s3097_s8 + $0x38] sm:$0xff] }
 0xb36   :  { %v2467_v21 = vpop.eup %2466 }
 0xb37   :  { %v1205_v22 = vsel %vm292_vm2, %v2467_v21, 0.0 }
 0xb38   :  { %1206 = vadd.xlane.f32.xlu0 %v1205_v22 }
 0xb3a   :  { %v2469_v25 = vpop.eup %2468 }
 0xb3b   :  { %v1208_v26 = vsel %vm292_vm2, %v2469_v25, 0.0 }
 0xb3c   :  { %1209 = vadd.xlane.f32.xlu1 %v1208_v26 }
 0xb4e   :  { %2410 = vrot.lane.b32.xlu0 %v2879_v42, %s2531_s9 }
 0xbb1   :  { %v1192_v30 = vpop.xlane.xlu1 %1191 }
 0xbb2   :  { %v1189_v54 = vpop.xlane.xlu0 %1188 }
 0xbb3   :  { %2470 = vrcp.f32 %v1189_v54 }
 0xbb4   :  { %2472 = vrcp.f32 %v1192_v30 }
 0xbb5   :  { %v1198_v33 = vpop.xlane.xlu1 %1197 }
 0xbb9   :  { %v1195_v29 = vpop.xlane.xlu0 %1194 }
 0xbba   :  { %2474 = vrcp.f32 %v1195_v29  ;;  %v1964_v29 = vld [vmem:[%s3094_s5 + $0xa] ss:$0 sm:$0xff] }
 0xbbb   :  { %2476 = vrcp.f32 %v1198_v33 }
 0xbbd   :  { %v2471_v56 = vpop.eup %2470  ;;  %v1204_v61 = vpop.xlane.xlu1 %1203 }
 0xbbe   :  { %v1212_v57 = vmul.f32 %v2471_v56, %v2457_v28  ;;  %v2473_v1 = vpop.eup %2472 }
 0xbbf   :  { %v1214_v41 = vmul.f32 %v2473_v1, %v2919_v20 }
 0xbc0   :  { %2217 = vmatprep.mubr.msk.f32.mxu1 %vm292_vm2, %v1212_v57 }
 0xbc1   :  { %v1201_v58 = vpop.xlane.xlu0 %1200 }
 0xbc2   :  { %2478 = vrcp.f32 %v1201_v58 }
 0xbc3   :  { %2480 = vrcp.f32 %v1204_v61 }
 0xbc4   :  { %v2475_v2 = vpop.eup %2474 }
 0xbc5   :  { %v1207_v59 = vpop.xlane.xlu0 %1206  ;;  %v2477_v3 = vpop.eup %2476  ;;  %v1216_v44 = vmul.f32 %v2475_v2, %v2461_v45  ;;  %v1973_v2 = vld [vmem:[%s3092_s3 + $0x30] sm:$0xff] }
 0xbc6   :  { %2482 = vrcp.f32 %v1207_v59  ;;  %v1218_v6 = vmul.f32 %v2477_v3, %v2459_v38  ;;  %v1974_v3 = vld [vmem:[%s3092_s3 + $0x38] sm:$0xff] }
 0xbc9   :  { %v2411_v35 = vpop.permute.xlu0 %2410  ;;  %v1210_v0 = vpop.xlane.xlu1 %1209 }
 0xbca   :  { %v2413_v62 = vunpack.i.h.bf16 %v2411_v35  ;;  %v2412_v36 = vunpack.i.l.bf16 %v2411_v35  ;;  %2484 = vrcp.f32 %v1210_v0 }
 0xbcc   :  { %v2345_v42 = vpack.c.bf16 %v2413_v62, %v2412_v36  ;;  %v2479_v4 = vpop.eup %2478 }
 0xbcd   :  { %v2481_v50 = vpop.eup %2480  ;;  %v1220_v8 = vmul.f32 %v2479_v4, %v2465_v53  ;;  %v1979_v4 = vld [vmem:[%s3093_s4 + $0x40] sm:$0xff] }
 0xbce   :  { %2346 = vmatprep.subr.bf16.mxu1 %v2345_v42  ;;  %v1222_v10 = vmul.f32 %v2481_v50, %v2463_v51  ;;  %v1981_v50 = vld [vmem:[%s3093_s4 + $0x50] sm:$0xff] }
 0xbcf   :  { %2348 = vmatpush3.bf16.msra.mxu1 %v2345_v42 }
 0xbd0   :  { %v2483_v9 = vpop.eup %2482 }
 0xbd1   :  { %v1224_v11 = vmul.f32 %v2483_v9, %v2467_v21  ;;  %v1982_v9 = vld [vmem:[%s3093_s4 + $0x58] sm:$0xff] }
 0xbd2   :  { %2218 = vmatmul.mubr.msk.f32.vlgmr.msra.gmra.mrb[12].mxu1 %vm292_vm2, %v1214_v41 }
 0xbd3   :  { %2220 = vmatprep.mubr.msk.f32.mxu1 %vm292_vm2, %v1216_v44  ;;  %v2361_v44 = vpack.c.bf16 %v1974_v3, %v1973_v2 }
 0xbd4   :  { %v2485_v55 = vpop.eup %2484 }
 0xbd5   :  { %v1226_v13 = vmul.f32 %v2485_v55, %v2469_v25  ;;  %v2505_v25 = vld [vmem:[%s3097_s8 + $0x30] sm:$0xff]  ;;  %v1983_v55 = vld [vmem:[%s3093_s4 + $0x60] sm:$0xff] }
 0xbd6   :  { %2221 = vmatmul.mubr.msk.f32.gmra.mrb[14].mxu1 %vm292_vm2, %v1218_v6  ;;  %v1980_v6 = vld [vmem:[%s3093_s4 + $0x48] sm:$0xff] }
 0xbd7   :  { %2223 = vmatprep.mubr.msk.f32.mxu1 %vm292_vm2, %v1220_v8  ;;  %v2365_v8 = vpack.c.bf16 %v1980_v6, %v1979_v4 }
 0xbd9   :  { %2366 = vmatprep.subr.bf16.mxu0 %v2365_v8 }
 0xbda   :  { %2224 = vmatmul.mubr.msk.f32.gmra.mrb[16].mxu1 %vm292_vm2, %v1222_v10  ;;  %v2369_v10 = vpack.c.bf16 %v1982_v9, %v1981_v50 }
 0xbdb   :  { %2226 = vmatprep.mubr.msk.f32.mxu1 %vm292_vm2, %v1224_v11  ;;  %v1984_v11 = vld [vmem:[%s3093_s4 + $0x68] sm:$0xff] }
 0xbde   :  { %2227 = vmatmul.mubr.msk.f32.gmra.mrb[18].mxu1 %vm292_vm2, %v1226_v13  ;;  %v2373_v13 = vpack.c.bf16 %v1984_v11, %v1983_v55 }
 0xca5   :  { %v2219_v23 = vpop.f32.mrb[12].mxu1 }
 0xca6   :  { %v1323_v24 = vpop.f32.mrb[13].mxu1  ;;  %v1363_v28 = vmul.f32 %v2498_v27, %v2219_v23 }
 0xca7   :  { %v1362_v38 = vmul.f32 %v2500_v37, %v1323_v24 }
 0xca9   :  { %v2222_v20 = vpop.f32.mrb[14].mxu1 }
 0xcaa   :  { %v1365_v31 = vmul.f32 %v2499_v18, %v2222_v20  ;;  %v1333_v32 = vpop.f32.mrb[15].mxu1 }
 0xcab   :  { %v1364_v34 = vmul.f32 %v2501_v39, %v1333_v32  ;;  %v1969_v39 = vld [vmem:[%s3094_s5 + $0xc] ss:$0 sm:$0xff] }
 0xcac   :  { %v1371_v40 = vadd.f32 %v1365_v31, %v1363_v28 }
 0xcad   :  { %v1370_v43 = vadd.f32 %v1364_v34, %v1362_v38  ;;  %v2225_v45 = vpop.f32.mrb[16].mxu1 }
 0xcae   :  { %v1367_v47 = vmul.f32 %v2502_v46, %v2225_v45  ;;  %v1343_v48 = vpop.f32.mrb[17].mxu1 }
 0xcaf   :  { %v1366_v51 = vmul.f32 %v2503_v49, %v1343_v48 }
 0xcb0   :  { %v1373_v12 = vadd.f32 %v1371_v40, %v1367_v47  ;;  %v1970_v40 = vld [vmem:[%s3094_s5 + $0xd] ss:$0 sm:$0xff] }
 0xcb1   :  { %v1372_v52 = vadd.f32 %v1370_v43, %v1366_v51  ;;  %v2228_v53 = vpop.f32.mrb[18].mxu1 }
 0xcb2   :  { %v1369_v21 = vmul.f32 %v2504_v19, %v2228_v53  ;;  %v1353_v22 = vpop.f32.mrb[19].mxu1  ;;  %v1976_v19 = vld [vmem:[%s3094_s5 + $0x9] ss:$0 sm:$0xff] }
 0xcb3   :  { %v1368_v26 = vmul.f32 %v2505_v25, %v1353_v22 }
 0xcb4   :  { %v1375_v54 = vadd.f32 %v1373_v12, %v1369_v21  ;;  %v1985_v12 = vld [vmem:[%s3093_s4 + $0x70] sm:$0xff] }
 0xcb5   :  { %v1374_v56 = vadd.f32 %v1372_v52, %v1368_v26  ;;  %v1986_v52 = vld [vmem:[%s3093_s4 + $0x78] sm:$0xff] }
 0xcb6   :  { %v2377_v53 = vpack.c.bf16 %v1986_v52, %v1985_v12 }
 0xcb7   :  { %2237 = vmatprep.mubr.msk.f32.mxu0 %vm63_vm0, %v1374_v56 }
 0xcb8   :  { %2238 = vmatmul.mubr.msk.f32.vlgmr.msra.gmra.mrb[22].mxu0 %vm63_vm0, %v1375_v54 }
 0xcb9   :  { %2368 = vmatpush3.bf16.msra.mxu0 %v2365_v8 }
 0xcba   :  { %2370 = vmatprep.subr.bf16.mxu0 %v2369_v10 }
 0xcbd   :  { %2372 = vmatpush3.bf16.msra.mxu0 %v2369_v10 }
 0xcbe   :  { %2374 = vmatprep.subr.bf16.mxu0 %v2373_v13 }
 0xcc1   :  { %2376 = vmatpush3.bf16.msra.mxu0 %v2373_v13 }
 0xcc2   :  { %2378 = vmatprep.subr.bf16.mxu0 %v2377_v53 }
 0xcc5   :  { %2380 = vmatpush3.bf16.msra.mxu0 %v2377_v53 }
 0xd8b   :  { %v2239_v30 = vpop.f32.mrb[22].mxu0 }
 0xd8c   :  { %v1464_v57 = vadd.f32 %v2239_v30, %v1964_v29  ;;  %v1458_v58 = vpop.f32.mrb[23].mxu0 }
 0xd8d   :  { %v1459_v33 = vadd.f32 %v1964_v29, %v1458_v58  ;;  %v1988_v29 = vld [vmem:[%s3094_s5 + $0xb] ss:$0 sm:$0xff] }
 0xd8e   :  { %v1468_v59 = vadd.f32 %v1464_v57, %v2870_v5  ;;  %v1971_v5 = vld [vmem:[%s3092_s3 + $0x20] sm:$0xff] }
 0xd8f   :  { %v1467_v61 = vadd.f32 %v1459_v33, %v2868_v7  ;;  %v1972_v7 = vld [vmem:[%s3092_s3 + $0x28] sm:$0xff] }
 0xd90   :  { %v1474_v35 = vsel %vm63_vm0, %v1468_v59, 0.0  ;;  %v1480_v0 = vmul.f32 %v1468_v59, %v1468_v59  ;;  %v2357_v41 = vpack.c.bf16 %v1972_v7, %v1971_v5 }
 0xd91   :  { %1475 = vadd.xlane.f32.xlu1 %v1474_v35  ;;  %v1471_v62 = vsel %vm63_vm0, %v1467_v61, 0.0  ;;  %v1479_v36 = vmul.f32 %v1467_v61, %v1467_v61 }
 0xd92   :  { %v1484_v1 = vsel %vm63_vm0, %v1480_v0, 0.0  ;;  %2358 = vmatprep.subr.bf16.mxu1 %v2357_v41 }
 0xd93   :  { %v1481_v42 = vsel %vm63_vm0, %v1479_v36, 0.0  ;;  %2360 = vmatpush3.bf16.msra.mxu1 %v2357_v41 }
 0xd94   :  { %2362 = vmatprep.subr.bf16.mxu1 %v2361_v44 }
 0xd95   :  { %1472 = vadd.xlane.f32.xlu1 %v1471_v62 }
 0xd97   :  { %2364 = vmatpush3.bf16.msra.mxu1 %v2361_v44 }
 0xd99   :  { %1482 = vadd.xlane.f32.xlu1 %v1481_v42 }
 0xd9d   :  { %1485 = vadd.xlane.f32.xlu1 %v1484_v1 }
 0xe1e   :  { %v1476_v14 = vpop.xlane.xlu1 %1475 }
 0xe1f   :  { %v1478_v63 = vmul.f32 0.03125, %v1476_v14 }
 0xe21   :  { %v1490_v27 = vmul.f32 %v1478_v63, %v1478_v63  ;;  %v1494_v43 = vsub.f32 %v1468_v59, %v1478_v63  ;;  %v1993_v63 = vld [vmem:[%s3094_s5 + $0xe] ss:$0 sm:$0xff] }
 0xe22   :  { %v1473_v60 = vpop.xlane.xlu1 %1472 }
 0xe23   :  { %v1477_v15 = vmul.f32 0.03125, %v1473_v60 }
 0xe25   :  { %v1489_v17 = vmul.f32 %v1477_v15, %v1477_v15  ;;  %v1493_v37 = vsub.f32 %v1467_v61, %v1477_v15 }
 0xe26   :  { %v1483_v16 = vpop.xlane.xlu1 %1482 }
 0xe27   :  { %v1487_v23 = vmul.f32 0.03125, %v1483_v16 }
 0xe29   :  { %v1491_v24 = vsub.f32 %v1487_v23, %v1489_v17 }
 0xe2a   :  { %v1486_v20 = vpop.xlane.xlu1 %1485 }
 0xe2b   :  { %v1495_v28 = vadd.f32 1e-05, %v1491_v24  ;;  %v1488_v18 = vmul.f32 0.03125, %v1486_v20  ;;  %v1994_v20 = vld [vmem:[%s3094_s5 + $0xf] ss:$0 sm:$0xff] }
 0xe2d   :  { %2486 = vrsqrt.f32 %v1495_v28  ;;  %v1492_v31 = vsub.f32 %v1488_v18, %v1490_v27 }
 0xe2f   :  { %v1496_v32 = vadd.f32 1e-05, %v1492_v31 }
 0xe31   :  { %2488 = vrsqrt.f32 %v1496_v32 }
 0xe37   :  { %v2487_v38 = vpop.eup %2486 }
 0xe38   :  { %v1499_v34 = vmul.f32 %v2487_v38, %v1493_v37 }
 0xe3a   :  { %v1505_v45 = vmul.f32 %v1969_v39, %v1499_v34  ;;  %v1791_v34 = vld [vmem:[%s3095_s6] sm:$0xff] }
 0xe3b   :  { %v2489_v46 = vpop.eup %2488 }
 0xe3c   :  { %v1500_v47 = vmul.f32 %v2489_v46, %v1494_v43  ;;  %v1511_v48 = vadd.f32 %v1970_v40, %v1505_v45  ;;  %v1793_v43 = vld [vmem:[%s3095_s6 + $0x10] sm:$0xff]  ;;  %v1794_v46 = vld [vmem:[%s3095_s6 + $0x18] sm:$0xff] }
 0xe3e   :  { %v1506_v49 = vmul.f32 %v1969_v39, %v1500_v47  ;;  %2248 = vmatprep.mubr.msk.f32.mxu1 %vm63_vm0, %v1511_v48  ;;  %v2385_v47 = vpack.c.bf16 %v1794_v46, %v1793_v43 }
 0xe40   :  { %v1512_v51 = vadd.f32 %v1970_v40, %v1506_v49  ;;  %v1792_v40 = vld [vmem:[%s3095_s6 + $0x8] sm:$0xff] }
 0xe41   :  { %v2381_v45 = vpack.c.bf16 %v1792_v40, %v1791_v34 }
 0xe42   :  { %2249 = vmatmul.mubr.msk.f32.vlgmr.msra.gmra.mrb[20].mxu1 %vm63_vm0, %v1512_v51 }
 0xe43   :  { %2382 = vmatprep.subr.bf16.mxu1 %v2381_v45 }
 0xe44   :  { %2384 = vmatpush3.bf16.msra.mxu1 %v2381_v45 }
 0xe45   :  { %2386 = vmatprep.subr.bf16.mxu1 %v2385_v47 }
 0xe48   :  { %2388 = vmatpush3.bf16.msra.mxu1 %v2385_v47 }
 0xf15   :  { %v2250_v21 = vpop.f32.mrb[20].mxu1 }
 0xf16   :  { %v1601_v22 = vadd.f32 %v2250_v21, %v1976_v19  ;;  %v1595_v25 = vpop.f32.mrb[21].mxu1 }
 0xf17   :  { %v1596_v26 = vadd.f32 %v1976_v19, %v1595_v25 }
 0xf18   :  { %v1605_v56 = vmax.f32 %v1601_v22, 0.0 }
 0xf19   :  { %v1604_v54 = vmax.f32 %v1596_v26, 0.0 }
 0xf1b   :  { %2267 = vmatprep.mubr.msk.f32.mxu0 %vm772_vm3, %v1604_v54 }
 0xf1c   :  { %2268 = vmatmul.mubr.msk.f32.vlgmr.msra.gmra.mrb[24].mxu0 %vm772_vm3, %v1605_v56 }
 0xfef   :  { %v2269_v30 = vpop.f32.mrb[24].mxu0 }
 0xff0   :  { %v1698_v57 = vadd.f32 %v2269_v30, %v1988_v29  ;;  %v1692_v58 = vpop.f32.mrb[25].mxu0 }
 0xff1   :  { %v1693_v33 = vadd.f32 %v1988_v29, %v1692_v58  ;;  %v1995_v58 = vld [vmem:[%s3096_s7] ss:$0 sm:$0xff] }
 0xff2   :  { %v1702_v59 = vadd.f32 %v1698_v57, %v1512_v51 }
 0xff3   :  { %v1701_v61 = vadd.f32 %v1693_v33, %v1511_v48 }
 0xff4   :  { %v1708_v35 = vsel %vm63_vm0, %v1702_v59, 0.0  ;;  %v1714_v0 = vmul.f32 %v1702_v59, %v1702_v59 }
 0xff5   :  { %1709 = vadd.xlane.f32.xlu1 %v1708_v35  ;;  %v1713_v62 = vmul.f32 %v1701_v61, %v1701_v61  ;;  %v1705_v42 = vsel %vm63_vm0, %v1701_v61, 0.0 }
 0xff6   :  { %v1718_v1 = vsel %vm63_vm0, %v1714_v0, 0.0 }
 0xff7   :  { %v1715_v36 = vsel %vm63_vm0, %v1713_v62, 0.0 }
 0xff8   :  { %1716 = vadd.xlane.f32.xlu0 %v1715_v36 }
 0xff9   :  { %1706 = vadd.xlane.f32.xlu1 %v1705_v42 }
 0xffd   :  { %1719 = vadd.xlane.f32.xlu1 %v1718_v1 }
0x1082   :  { %v1710_v5 = vpop.xlane.xlu1 %1709 }
0x1083   :  { %v1712_v41 = vmul.f32 0.03125, %v1710_v5  ;;  %v1997_v5 = vld [vmem:[%s3096_s7 + $0x2] ss:$0 sm:$0xff] }
0x1085   :  { %v1717_v7 = vpop.xlane.xlu0 %1716  ;;  %v1724_v50 = vmul.f32 %v1712_v41, %v1712_v41  ;;  %v1728_v60 = vsub.f32 %v1702_v59, %v1712_v41  ;;  %v1996_v59 = vld [vmem:[%s3096_s7 + $0x1] ss:$0 sm:$0xff] }
0x1086   :  { %v1707_v2 = vpop.xlane.xlu1 %1706  ;;  %v1721_v44 = vmul.f32 0.03125, %v1717_v7 }
0x1087   :  { %v1711_v3 = vmul.f32 0.03125, %v1707_v2 }
0x1089   :  { %v1723_v4 = vmul.f32 %v1711_v3, %v1711_v3  ;;  %v1727_v13 = vsub.f32 %v1701_v61, %v1711_v3 }
0x108a   :  { %v1720_v6 = vpop.xlane.xlu1 %1719 }
0x108b   :  { %v1725_v8 = vsub.f32 %v1721_v44, %v1723_v4  ;;  %v1722_v9 = vmul.f32 0.03125, %v1720_v6 }
0x108d   :  { %v1729_v10 = vadd.f32 1e-05, %v1725_v8  ;;  %v1726_v55 = vsub.f32 %v1722_v9, %v1724_v50 }
0x108f   :  { %2490 = vrsqrt.f32 %v1729_v10  ;;  %v1730_v11 = vadd.f32 1e-05, %v1726_v55 }
0x1091   :  { %2492 = vrsqrt.f32 %v1730_v11 }
0x1099   :  { %v2491_v14 = vpop.eup %2490 }
0x109a   :  { %v1733_v15 = vmul.f32 %v2491_v14, %v1727_v13 }
0x109b   :  { %v2493_v16 = vpop.eup %2492 }
0x109c   :  { %v1734_v17 = vmul.f32 %v2493_v16, %v1728_v60  ;;  %v1739_v23 = vmul.f32 %v1993_v63, %v1733_v15 }
0x109e   :  { %v1740_v24 = vmul.f32 %v1993_v63, %v1734_v17  ;;  %v1745_v18 = vadd.f32 %v1994_v20, %v1739_v23 }
0x10a0   :  { %v1746_v27 = vadd.f32 %v1994_v20, %v1740_v24  ;;  %v1749_v31 = vsel %vm63_vm0, %v1745_v18, 0.0  ;;  %v1757_v32 = vmul.f32 %v1745_v18, %v1745_v18 }
0x10a2   :  { %v1752_v28 = vsel %vm63_vm0, %v1746_v27, 0.0  ;;  %v1759_v37 = vsel %vm63_vm0, %v1757_v32, 0.0  ;;  %v1758_v38 = vmul.f32 %v1746_v27, %v1746_v27 }
0x10a3   :  { %1753 = vadd.xlane.f32.xlu1 %v1752_v28 }
0x10a4   :  { %v1762_v39 = vsel %vm63_vm0, %v1758_v38, 0.0 }
0x10a7   :  { %1750 = vadd.xlane.f32.xlu1 %v1749_v31 }
0x10ab   :  { %1760 = vadd.xlane.f32.xlu1 %v1759_v37 }
0x10af   :  { %1763 = vadd.xlane.f32.xlu1 %v1762_v39 }
0x1130   :  { %v1754_v48 = vpop.xlane.xlu1 %1753 }
0x1131   :  { %v1756_v52 = vmul.f32 0.03125, %v1754_v48 }
0x1133   :  { %v1768_v25 = vmul.f32 %v1756_v52, %v1756_v52  ;;  %v1772_v61 = vsub.f32 %v1746_v27, %v1756_v52 }
0x1134   :  { %v1751_v49 = vpop.xlane.xlu1 %1750 }
0x1135   :  { %v1755_v51 = vmul.f32 0.03125, %v1751_v49 }
0x1137   :  { %v1767_v53 = vmul.f32 %v1755_v51, %v1755_v51  ;;  %v1771_v30 = vsub.f32 %v1745_v18, %v1755_v51 }
0x1138   :  { %v1761_v12 = vpop.xlane.xlu1 %1760 }
0x1139   :  { %v1765_v19 = vmul.f32 0.03125, %v1761_v12 }
0x113b   :  { %v1769_v21 = vsub.f32 %v1765_v19, %v1767_v53 }
0x113c   :  { %v1764_v22 = vpop.xlane.xlu1 %1763 }
0x113d   :  { %v1773_v26 = vadd.f32 1e-05, %v1769_v21  ;;  %v1766_v54 = vmul.f32 0.03125, %v1764_v22 }
0x113f   :  { %2494 = vrsqrt.f32 %v1773_v26  ;;  %v1770_v56 = vsub.f32 %v1766_v54, %v1768_v25 }
0x1141   :  { %v1774_v29 = vadd.f32 1e-05, %v1770_v56 }
0x1143   :  { %2496 = vrsqrt.f32 %v1774_v29 }
0x1149   :  { %v2495_v57 = vpop.eup %2494 }
0x114a   :  { %v1777_v33 = vmul.f32 %v2495_v57, %v1771_v30 }
0x114c   :  { %v1783_v35 = vmul.f32 %v1995_v58, %v1777_v33 }
0x114d   :  { %v2497_v62 = vpop.eup %2496 }
0x114e   :  { %v1778_v36 = vmul.f32 %v2497_v62, %v1772_v61  ;;  %v1789_v42 = vadd.f32 %v1996_v59, %v1783_v35 }
0x1150   :  { %v1784_v0 = vmul.f32 %v1995_v58, %v1778_v36  ;;  %2278 = vmatprep.mubr.msk.f32.mxu1 %vm63_vm0, %v1789_v42 }
0x1152   :  { %v1790_v1 = vadd.f32 %v1996_v59, %v1784_v0 }
0x1154   :  { %2279 = vmatmul.mubr.msk.f32.vlgmr.msra.gmra.mrb[22].mxu1 %vm63_vm0, %v1790_v1 }
0x1227   :  { %v2280_v7 = vpop.f32.mrb[22].mxu1 }
0x1228   :  { %v1878_v2 = vadd.f32 %v2280_v7, %v1997_v5  ;;  %v1872_v41 = vpop.f32.mrb[23].mxu1 }
0x1229   :  { %v1873_v3 = vadd.f32 %v1997_v5, %v1872_v41 }
0x122a   :  { %1882 = vst [vmem:[#allocation2 + $0x8] sm:$0xff] %v1878_v2 }
0x122b   :  { %1881 = vst [vmem:[#allocation2] sm:$0xff] %v1873_v3 }
0x122c   :  { %2517 = shalt.err (!%p2514_p4)
}
0x122d   :  { %s2518_s7 = scalar_lea.hbm %s3099_s10, 256 }
0x122e   :  { %p2519_p5 = scmp.ne.s32.totalorder %s3099_s10, %s2518_s7  ;;  %p2522_p6 = scmp.lt.u32.totalorder %s2518_s7, %s3099_s10 }
0x1230   :  { %p2524_p7 = pnand %p2522_p6, %p2519_p5 }
0x1232   :  { %2527 = shalt.err (!%p2524_p7)
}
0x1233   :  { %s2533_s17 = smov 128   ;;  %s2534_s18 = smov 8  }
0x1234   :  { %1894 = dma.vmem_to_hbm [thread:$0]  %s1889_s12, 256, %s3099_s10, [#allocation3], %s2533_s17, %s2533_s17, %s2534_s18  }
0x1235   :  { %2528 = dma.done.wait [#allocation3], 256  }
0x1236   :  { %2529 = vsyncadd [#allocation3], 4294967040 }
0x1237   :  { %1898 = vsyncpa [#allocation3], 1 }

</bundles_post_ra>
